<compile_context>
chip_gen: v5e
topology: v5e:2x2
jax: 0.10.0
libtpu: 0.0.40
codegen_flags: <defaults>
</compile_context>

<pallas_src>
import functools

import jax
import jax.numpy as jnp
from jax.experimental import pallas as pl
from jax.experimental.pallas import tpu as pltpu

EPS = 1e-5
LANE = 128


# --------------------------------------------------------------------------
# small static helpers
# --------------------------------------------------------------------------
def _round_up(c, m=LANE):
    return ((c + m - 1) // m) * m


def _pick_tm(m):
    """Largest row-tile (<=512, multiple of 8) that divides M."""
    for t in (512, 256, 128, 64, 32, 16, 8):
        if m % t == 0:
            return t
    return m


def _pad_last(a, target, value=0.0):
    pad = target - a.shape[-1]
    if pad == 0:
        return a
    cfg = [(0, 0)] * (a.ndim - 1) + [(0, pad)]
    return jnp.pad(a, cfg, constant_values=value)


def _pad_mat(w, rows, cols):
    return jnp.pad(w, ((0, rows - w.shape[0]), (0, cols - w.shape[1])))


# --------------------------------------------------------------------------
# Pallas kernels
# --------------------------------------------------------------------------
def _matmul_stats_kernel(x_ref, sc_ref, sh_ref, w_ref, y_ref, st_ref, *,
                         fuse_bn_relu):
    """1x1 conv tile: optional fused BN+ReLU prologue, MXU matmul, stats."""
    x = x_ref[...]
    if fuse_bn_relu:
        h = jnp.maximum(x.astype(jnp.float32) * sc_ref[...] + sh_ref[...], 0.0)
        h = h.astype(jnp.bfloat16)
    else:
        h = x
    y = jnp.dot(h, w_ref[...], preferred_element_type=jnp.float32)   # (TM, Cout)
    y_ref[...] = y.astype(y_ref.dtype)
    c = y.shape[1]
    # per-tile channel stats while the fp32 result is still in registers/VMEM
    st_ref[0:1, 0:1, :] = jnp.sum(y, axis=0, keepdims=True).reshape(1, 1, c)
    st_ref[0:1, 1:2, :] = jnp.sum(y * y, axis=0, keepdims=True).reshape(1, 1, c)


def _conv3x3_stats_kernel(x_ref, sc_ref, sh_ref, w_ref, y_ref, st_ref, pad_ref):
    """Per-image 3x3 conv (stride=1, pad=1) with fused BN+ReLU prologue.

    x_ref: (1, H, W, C) raw conv1 output.  w_ref: (9, C, Cout), tap-major
    (kh*3+kw, in, out).  The halo is built in a VMEM scratch; the conv is the
    sum of 9 shifted MXU dots (no HBM im2col).
    """
    _, hh, ww, c = x_ref.shape
    cout = w_ref.shape[2]
    sc = sc_ref[...].reshape(1, 1, c)
    sh = sh_ref[...].reshape(1, 1, c)
    h = jnp.maximum(x_ref[0].astype(jnp.float32) * sc + sh, 0.0)      # (H, W, C)
    pad_ref[...] = jnp.zeros_like(pad_ref)
    pad_ref[1:hh + 1, 1:ww + 1, :] = h
    acc = jnp.zeros((hh * ww, cout), jnp.float32)
    for kh in range(3):
        for kw in range(3):
            patch = pad_ref[kh:kh + hh, kw:kw + ww, :]
            patch = patch.reshape(hh * ww, c).astype(jnp.bfloat16)
            acc = acc + jnp.dot(patch, w_ref[kh * 3 + kw],
                                preferred_element_type=jnp.float32)
    y_ref[0] = acc.reshape(hh, ww, cout).astype(y_ref.dtype)
    st_ref[0:1, 0:1, :] = jnp.sum(acc, axis=0, keepdims=True).reshape(1, 1, cout)
    st_ref[0:1, 1:2, :] = jnp.sum(acc * acc, axis=0, keepdims=True).reshape(1, 1, cout)


def _bn_add_relu_kernel(y_ref, sc_ref, sh_ref, id_ref, o_ref):
    """BN3 (precomputed scale/shift) + residual add + ReLU, tiled over rows."""
    y = y_ref[...].astype(jnp.float32) * sc_ref[...] + sh_ref[...]
    o_ref[...] = jnp.maximum(y + id_ref[...].astype(jnp.float32), 0.0)


# --------------------------------------------------------------------------
# pallas_call wrappers
# --------------------------------------------------------------------------
def _conv1x1_stats(x, w, scale=None, shift=None, *, tm):
    m, cin = x.shape
    cout = w.shape[1]
    g = m // tm
    fuse = scale is not None
    if not fuse:                       # conv1: no prologue; dummies are unread
        scale = jnp.ones((1, cin), jnp.float32)
        shift = jnp.zeros((1, cin), jnp.float32)
    kernel = functools.partial(_matmul_stats_kernel, fuse_bn_relu=fuse)
    return pl.pallas_call(
        kernel,
        out_shape=(jax.ShapeDtypeStruct((m, cout), jnp.bfloat16),
                   jax.ShapeDtypeStruct((g, 2, cout), jnp.float32)),
        grid_spec=pltpu.PrefetchScalarGridSpec(
            num_scalar_prefetch=0,
            grid=(g,),
            in_specs=[
                pl.BlockSpec((tm, cin), lambda i: (i, 0)),
                pl.BlockSpec((1, cin), lambda i: (0, 0)),
                pl.BlockSpec((1, cin), lambda i: (0, 0)),
                pl.BlockSpec((cin, cout), lambda i: (0, 0)),
            ],
            out_specs=[
                pl.BlockSpec((tm, cout), lambda i: (i, 0)),
                pl.BlockSpec((1, 2, cout), lambda i: (i, 0, 0)),
            ],
        ),
        compiler_params=pltpu.CompilerParams(
            dimension_semantics=("parallel",)),
    )(x, scale, shift, w)


def _conv3x3_stats(x_img, scale, shift, w_taps):
    n, hh, ww, c = x_img.shape
    cout = w_taps.shape[2]
    return pl.pallas_call(
        _conv3x3_stats_kernel,
        out_shape=(jax.ShapeDtypeStruct((n, hh, ww, cout), jnp.bfloat16),
                   jax.ShapeDtypeStruct((n, 2, cout), jnp.float32)),
        grid_spec=pltpu.PrefetchScalarGridSpec(
            num_scalar_prefetch=0,
            grid=(n,),
            in_specs=[
                pl.BlockSpec((1, hh, ww, c), lambda i: (i, 0, 0, 0)),
                pl.BlockSpec((1, c), lambda i: (0, 0)),
                pl.BlockSpec((1, c), lambda i: (0, 0)),
                pl.BlockSpec((9, c, cout), lambda i: (0, 0, 0)),
            ],
            out_specs=[
                pl.BlockSpec((1, hh, ww, cout), lambda i: (i, 0, 0, 0)),
                pl.BlockSpec((1, 2, cout), lambda i: (i, 0, 0)),
            ],
            scratch_shapes=[pltpu.VMEM((hh + 2, ww + 2, c), jnp.float32)],
        ),
        compiler_params=pltpu.CompilerParams(
            dimension_semantics=("parallel",)),
    )(x_img, scale, shift, w_taps)


def _bn_add_relu(y, scale, shift, identity, *, tm):
    m, c = y.shape
    g = m // tm
    return pl.pallas_call(
        _bn_add_relu_kernel,
        out_shape=jax.ShapeDtypeStruct((m, c), jnp.float32),
        grid_spec=pltpu.PrefetchScalarGridSpec(
            num_scalar_prefetch=0,
            grid=(g,),
            in_specs=[
                pl.BlockSpec((tm, c), lambda i: (i, 0)),
                pl.BlockSpec((1, c), lambda i: (0, 0)),
                pl.BlockSpec((1, c), lambda i: (0, 0)),
                pl.BlockSpec((tm, c), lambda i: (i, 0)),
            ],
            out_specs=pl.BlockSpec((tm, c), lambda i: (i, 0)),
        ),
        compiler_params=pltpu.CompilerParams(
            dimension_semantics=("parallel",)),
    )(y, scale, shift, identity)


def _bn_scale_shift(stats, count, gamma, beta):
    """Turn per-tile (sum, sumsq) into per-channel BN scale/shift (fp32)."""
    s = jnp.sum(stats[:, 0, :], axis=0)
    sq = jnp.sum(stats[:, 1, :], axis=0)
    mean = s / count
    var = jnp.maximum(sq / count - mean * mean, 0.0)       # biased batch var
    scale = gamma * jax.lax.rsqrt(var + EPS)
    shift = beta - mean * scale
    return scale.reshape(1, -1), shift.reshape(1, -1)


# --------------------------------------------------------------------------
# Bottleneck forward
# --------------------------------------------------------------------------
def bottleneck_forward(x_nchw, params):
    """Bottleneck(inplanes, planes, stride=1, downsample=None), training-mode BN."""
    # TODO(synk): stride>1 / downsample branch not implemented (module default:
    #             stride=1, downsample=None -> identity residual, inplanes==4*planes).
    n, cin, hh, ww = x_nchw.shape
    p = params["w1"].shape[1]
    c4 = 4 * p
    assert cin == c4, "identity residual requires inplanes == 4 * planes"
    cp_in, cp, cp4 = _round_up(cin), _round_up(p), _round_up(c4)
    m = n * hh * ww
    tm = _pick_tm(m)

    # NCHW -> NHWC -> (M, C); zero-pad channels to lane multiples.
    x_nhwc = jnp.transpose(x_nchw, (0, 2, 3, 1)).astype(jnp.float32)
    x_id = _pad_last(x_nhwc.reshape(m, cin), cp_in)           # fp32 residual path
    xf = x_id.astype(jnp.bfloat16)                            # bf16 conv1 input

    # padded bf16 weights, fp32 BN affine params
    w1 = _pad_mat(params["w1"], cp_in, cp).astype(jnp.bfloat16)            # (Cin, P)
    w2 = jnp.pad(params["w2"],
                 ((0, 0), (0, cp - p), (0, cp - p))).astype(jnp.bfloat16)  # (9, P, P)
    w3 = _pad_mat(params["w3"], cp, cp4).astype(jnp.bfloat16)              # (P, 4P)
    g1 = _pad_last(params["g1"], cp, 1.0); b1 = _pad_last(params["b1"], cp)
    g2 = _pad_last(params["g2"], cp, 1.0); b2 = _pad_last(params["b2"], cp)
    g3 = _pad_last(params["g3"], cp4, 1.0); b3 = _pad_last(params["b3"], cp4)

    # conv1 (1x1): raw output + batch stats
    y1, st1 = _conv1x1_stats(xf, w1, tm=tm)
    sc1, sh1 = _bn_scale_shift(st1, m, g1, b1)

    # conv2 (3x3, pad=1): BN1+ReLU fused into prologue, in-kernel halo + 9 dots
    y2, st2 = _conv3x3_stats(y1.reshape(n, hh, ww, cp), sc1, sh1, w2)
    sc2, sh2 = _bn_scale_shift(st2, m, g2, b2)

    # conv3 (1x1): BN2+ReLU fused into prologue
    y3, st3 = _conv1x1_stats(y2.reshape(m, cp), w3, scale=sc2, shift=sh2, tm=tm)
    sc3, sh3 = _bn_scale_shift(st3, m, g3, b3)

    # BN3 + residual add + ReLU (fp32 identity for full-precision skip path)
    out = _bn_add_relu(y3, sc3, sh3, x_id, tm=tm)                          # (M, Cp4) f32
    out = out[:, :c4].reshape(n, hh, ww, c4)
    return jnp.transpose(out, (0, 3, 1, 2))                                # NCHW


# --------------------------------------------------------------------------
# Pure-JAX fp32 reference (mirrors PyTorch NCHW semantics) for validation
# --------------------------------------------------------------------------
def _bn_ref(x_nchw, gamma, beta):
    mean = jnp.mean(x_nchw, axis=(0, 2, 3), keepdims=True)
    var = jnp.mean((x_nchw - mean) ** 2, axis=(0, 2, 3), keepdims=True)
    return ((x_nchw - mean) * jax.lax.rsqrt(var + EPS)
            * gamma.reshape(1, -1, 1, 1) + beta.reshape(1, -1, 1, 1))


def bottleneck_reference(x, w1_oihw, w2_oihw, w3_oihw, params):
    dn = ("NCHW", "OIHW", "NCHW")
    conv = lambda a, w, pad: jax.lax.conv_general_dilated(
        a, w, window_strides=(1, 1), padding=pad, dimension_numbers=dn,
        precision=jax.lax.Precision.HIGHEST)
    out = jax.nn.relu(_bn_ref(conv(x, w1_oihw, "VALID"), params["g1"], params["b1"]))
    out = jax.nn.relu(_bn_ref(conv(out, w2_oihw, "SAME"), params["g2"], params["b2"]))
    out = _bn_ref(conv(out, w3_oihw, "VALID"), params["g3"], params["b3"])
    return jax.nn.relu(out + x)


# --------------------------------------------------------------------------
if __name__ == "__main__":
    # Small shapes: batch=2, inplanes=16, planes=4 (expansion 4 -> out=16), 8x8.
    N, inplanes, planes, H, W = 2, 16, 4, 8, 8
    key = jax.random.PRNGKey(0)
    kx, k1, k2, k3 = jax.random.split(key, 4)

    x = jax.random.normal(kx, (N, inplanes, H, W), dtype=jnp.float32)

    # PyTorch weight layouts (OIHW), deterministic init.
    w1_oihw = 0.1 * jax.random.normal(k1, (planes, inplanes, 1, 1), jnp.float32)
    w2_oihw = 0.1 * jax.random.normal(k2, (planes, planes, 3, 3), jnp.float32)
    w3_oihw = 0.1 * jax.random.normal(k3, (planes * 4, planes, 1, 1), jnp.float32)

    params = {
        # matmul layouts: w1/w3 (Cin, Cout); w2 tap-major (kh*3+kw, Cin, Cout).
        "w1": jnp.transpose(w1_oihw[:, :, 0, 0], (1, 0)),
        "w2": jnp.transpose(w2_oihw, (2, 3, 1, 0)).reshape(9, planes, planes),
        "w3": jnp.transpose(w3_oihw[:, :, 0, 0], (1, 0)),
        # BatchNorm affine params (PyTorch defaults: gamma=1, beta=0).
        "g1": jnp.ones((planes,), jnp.float32), "b1": jnp.zeros((planes,), jnp.float32),
        "g2": jnp.ones((planes,), jnp.float32), "b2": jnp.zeros((planes,), jnp.float32),
        "g3": jnp.ones((planes * 4,), jnp.float32), "b3": jnp.zeros((planes * 4,), jnp.float32),
    }

    out = jax.jit(bottleneck_forward)(x, params)
    out = jax.block_until_ready(out)

    ref = bottleneck_reference(x, w1_oihw, w2_oihw, w3_oihw, params)
    assert out.shape == (N, planes * 4, H, W), out.shape
    # bf16 MXU inputs (fp32 accumulation) -> tolerance loosened vs fp32 reference.
    assert jnp.allclose(out, ref, atol=6e-2, rtol=6e-2), \
        float(jnp.max(jnp.abs(out - ref)))

    print("KERNEL_OK")
</pallas_src>

<mosaic_0001>
module attributes {stable_mosaic.version = 11 : i64} {
  func.func @_matmul_stats_kernel(%arg0: i32, %arg1: memref<128x128xbf16, #tpu.memory_space<vmem>>, %arg2: memref<1x128xf32, #tpu.memory_space<vmem>>, %arg3: memref<1x128xf32, #tpu.memory_space<vmem>>, %arg4: memref<128x128xbf16, #tpu.memory_space<vmem>>, %arg5: memref<128x128xbf16, #tpu.memory_space<vmem>>, %arg6: memref<1x2x128xf32, #tpu.memory_space<vmem>>) attributes {dimension_semantics = [#tpu.dimension_semantics<parallel>], iteration_bounds = array<i64: 1>, scalar_prefetch = 0 : i64, scratch_operands = 0 : i64, tpu.core_type = #tpu.core_type<tc>, window_params = [{transform_indices = @transform_0, window_bounds = array<i64: 128, 128>}, {pipeline_mode = #tpu.pipeline_mode<synchronous>, transform_indices = @transform_1, window_bounds = array<i64: 1, 128>}, {pipeline_mode = #tpu.pipeline_mode<synchronous>, transform_indices = @transform_2, window_bounds = array<i64: 1, 128>}, {pipeline_mode = #tpu.pipeline_mode<synchronous>, transform_indices = @transform_3, window_bounds = array<i64: 128, 128>}, {transform_indices = @transform_4, window_bounds = array<i64: 128, 128>}, {transform_indices = @transform_5, window_bounds = array<i64: 1, 2, 128>}]} {
    %c0 = arith.constant 0 : index
    %c0_0 = arith.constant 0 : index
    %0 = vector.load %arg1[%c0, %c0_0] : memref<128x128xbf16, #tpu.memory_space<vmem>>, vector<128x128xbf16>
    %c0_1 = arith.constant 0 : index
    %c0_2 = arith.constant 0 : index
    %1 = vector.load %arg4[%c0_1, %c0_2] : memref<128x128xbf16, #tpu.memory_space<vmem>>, vector<128x128xbf16>
    %cst = arith.constant dense<0.000000e+00> : vector<128x128xf32>
    %2 = tpu.matmul %0, %1, %cst {dimension_numbers = #tpu.dot_dimension_numbers<[1], [0], [0], [1], [0, 0, 1, 1], [], []>} : vector<128x128xbf16>, vector<128x128xbf16>, vector<128x128xf32> -> vector<128x128xf32>
    %3 = arith.truncf %2 : vector<128x128xf32> to vector<128x128xbf16>
    %c0_3 = arith.constant 0 : index
    %c0_4 = arith.constant 0 : index
    %4 = vector.load %arg5[%c0_3, %c0_4] : memref<128x128xbf16, #tpu.memory_space<vmem>>, vector<128x128xbf16>
    tpu.vector_store %arg5[%c0_3, %c0_4], %3 {strides = array<i32>} : memref<128x128xbf16, #tpu.memory_space<vmem>>, vector<128x128xbf16>,
    %cst_5 = arith.constant dense<0.000000e+00> : vector<128xf32>
    %5 = vector.multi_reduction <add>, %2, %cst_5 [0] : vector<128x128xf32> to vector<128xf32>
    %6 = vector.shape_cast %5 : vector<128xf32> to vector<1x128xf32>
    %7 = vector.shape_cast %6 : vector<1x128xf32> to vector<1x1x128xf32>
    %c0_6 = arith.constant 0 : index
    %c0_7 = arith.constant 0 : index
    %c0_8 = arith.constant 0 : index
    %8 = vector.load %arg6[%c0_6, %c0_7, %c0_8] : memref<1x2x128xf32, #tpu.memory_space<vmem>>, vector<1x1x128xf32>
    tpu.vector_store %arg6[%c0_6, %c0_7, %c0_8], %7 {strides = array<i32>} : memref<1x2x128xf32, #tpu.memory_space<vmem>>, vector<1x1x128xf32>,
    %9 = arith.mulf %2, %2 : vector<128x128xf32>
    %cst_9 = arith.constant dense<0.000000e+00> : vector<128xf32>
    %10 = vector.multi_reduction <add>, %9, %cst_9 [0] : vector<128x128xf32> to vector<128xf32>
    %11 = vector.shape_cast %10 : vector<128xf32> to vector<1x128xf32>
    %12 = vector.shape_cast %11 : vector<1x128xf32> to vector<1x1x128xf32>
    %c0_10 = arith.constant 0 : index
    %c1 = arith.constant 1 : index
    %c0_11 = arith.constant 0 : index
    %13 = vector.load %arg6[%c0_10, %c1, %c0_11] : memref<1x2x128xf32, #tpu.memory_space<vmem>>, vector<1x1x128xf32>
    tpu.vector_store %arg6[%c0_10, %c1, %c0_11], %12 {strides = array<i32>} : memref<1x2x128xf32, #tpu.memory_space<vmem>>, vector<1x1x128xf32>,
    return
  }
  func.func @transform_0(%arg0: i32) -> (i32, i32) {
    %c0_i32 = arith.constant 0 : i32
    %c0_i32_0 = arith.constant 0 : i32
    return %arg0, %c0_i32 : i32, i32
  }
  func.func @transform_1(%arg0: i32) -> (i32, i32) {
    %c0_i32 = arith.constant 0 : i32
    %c0_i32_0 = arith.constant 0 : i32
    %c0_i32_1 = arith.constant 0 : i32
    return %c0_i32, %c0_i32_0 : i32, i32
  }
  func.func @transform_2(%arg0: i32) -> (i32, i32) {
    %c0_i32 = arith.constant 0 : i32
    %c0_i32_0 = arith.constant 0 : i32
    %c0_i32_1 = arith.constant 0 : i32
    return %c0_i32, %c0_i32_0 : i32, i32
  }
  func.func @transform_3(%arg0: i32) -> (i32, i32) {
    %c0_i32 = arith.constant 0 : i32
    %c0_i32_0 = arith.constant 0 : i32
    %c0_i32_1 = arith.constant 0 : i32
    return %c0_i32, %c0_i32_0 : i32, i32
  }
  func.func @transform_4(%arg0: i32) -> (i32, i32) {
    %c0_i32 = arith.constant 0 : i32
    %c0_i32_0 = arith.constant 0 : i32
    return %arg0, %c0_i32 : i32, i32
  }
  func.func @transform_5(%arg0: i32) -> (i32, i32, i32) {
    %c0_i32 = arith.constant 0 : i32
    %c0_i32_0 = arith.constant 0 : i32
    %c0_i32_1 = arith.constant 0 : i32
    return %arg0, %c0_i32, %c0_i32_0 : i32, i32, i32
  }
}

module attributes {stable_mosaic.version = 11 : i64} {
  func.func @_conv3x3_stats_kernel(%arg0: i32, %arg1: memref<1x8x8x128xbf16, #tpu.memory_space<vmem>>, %arg2: memref<1x128xf32, #tpu.memory_space<vmem>>, %arg3: memref<1x128xf32, #tpu.memory_space<vmem>>, %arg4: memref<9x128x128xbf16, #tpu.memory_space<vmem>>, %arg5: memref<1x8x8x128xbf16, #tpu.memory_space<vmem>>, %arg6: memref<1x2x128xf32, #tpu.memory_space<vmem>>, %arg7: memref<10x10x128xf32, #tpu.memory_space<vmem>>) attributes {dimension_semantics = [#tpu.dimension_semantics<parallel>], iteration_bounds = array<i64: 2>, scalar_prefetch = 0 : i64, scratch_operands = 1 : i64, tpu.core_type = #tpu.core_type<tc>, window_params = [{transform_indices = @transform_0, window_bounds = array<i64: 1, 8, 8, 128>}, {pipeline_mode = #tpu.pipeline_mode<synchronous>, transform_indices = @transform_1, window_bounds = array<i64: 1, 128>}, {pipeline_mode = #tpu.pipeline_mode<synchronous>, transform_indices = @transform_2, window_bounds = array<i64: 1, 128>}, {pipeline_mode = #tpu.pipeline_mode<synchronous>, transform_indices = @transform_3, window_bounds = array<i64: 9, 128, 128>}, {transform_indices = @transform_4, window_bounds = array<i64: 1, 8, 8, 128>}, {transform_indices = @transform_5, window_bounds = array<i64: 1, 2, 128>}]} {
    %c0 = arith.constant 0 : index
    %c0_0 = arith.constant 0 : index
    %0 = vector.load %arg2[%c0, %c0_0] : memref<1x128xf32, #tpu.memory_space<vmem>>, vector<1x128xf32>
    %1 = vector.shape_cast %0 : vector<1x128xf32> to vector<1x1x128xf32>
    %c0_1 = arith.constant 0 : index
    %c0_2 = arith.constant 0 : index
    %2 = vector.load %arg3[%c0_1, %c0_2] : memref<1x128xf32, #tpu.memory_space<vmem>>, vector<1x128xf32>
    %3 = vector.shape_cast %2 : vector<1x128xf32> to vector<1x1x128xf32>
    %c0_3 = arith.constant 0 : index
    %c0_4 = arith.constant 0 : index
    %c0_5 = arith.constant 0 : index
    %c0_6 = arith.constant 0 : index
    %4 = vector.load %arg1[%c0_3, %c0_4, %c0_5, %c0_6] : memref<1x8x8x128xbf16, #tpu.memory_space<vmem>>, vector<1x8x8x128xbf16>
    %5 = vector.shape_cast %4 : vector<1x8x8x128xbf16> to vector<8x8x128xbf16>
    %6 = arith.extf %5 : vector<8x8x128xbf16> to vector<8x8x128xf32>
    %7 = vector.broadcast %1 : vector<1x1x128xf32> to vector<8x8x128xf32>
    %8 = arith.mulf %6, %7 : vector<8x8x128xf32>
    %9 = vector.broadcast %3 : vector<1x1x128xf32> to vector<8x8x128xf32>
    %10 = arith.addf %8, %9 : vector<8x8x128xf32>
    %cst = arith.constant 0.000000e+00 : f32
    %11 = vector.broadcast %cst : f32 to vector<8x8x128xf32>
    %12 = arith.maximumf %10, %11 : vector<8x8x128xf32>
    %cst_7 = arith.constant 0.000000e+00 : f32
    %13 = vector.broadcast %cst_7 : f32 to vector<10x10x128xf32>
    %c0_8 = arith.constant 0 : index
    %c0_9 = arith.constant 0 : index
    %c0_10 = arith.constant 0 : index
    %14 = vector.load %arg7[%c0_8, %c0_9, %c0_10] : memref<10x10x128xf32, #tpu.memory_space<vmem>>, vector<10x10x128xf32>
    tpu.vector_store %arg7[%c0_8, %c0_9, %c0_10], %13 {strides = array<i32>} : memref<10x10x128xf32, #tpu.memory_space<vmem>>, vector<10x10x128xf32>,
    %c1 = arith.constant 1 : index
    %c1_11 = arith.constant 1 : index
    %c0_12 = arith.constant 0 : index
    %15 = vector.load %arg7[%c1, %c1_11, %c0_12] : memref<10x10x128xf32, #tpu.memory_space<vmem>>, vector<8x8x128xf32>
    tpu.vector_store %arg7[%c1, %c1_11, %c0_12], %12 {strides = array<i32>} : memref<10x10x128xf32, #tpu.memory_space<vmem>>, vector<8x8x128xf32>,
    %cst_13 = arith.constant 0.000000e+00 : f32
    %16 = vector.broadcast %cst_13 : f32 to vector<64x128xf32>
    %c0_14 = arith.constant 0 : index
    %c0_15 = arith.constant 0 : index
    %c0_16 = arith.constant 0 : index
    %17 = vector.load %arg7[%c0_14, %c0_15, %c0_16] : memref<10x10x128xf32, #tpu.memory_space<vmem>>, vector<8x8x128xf32>
    %18 = vector.shape_cast %17 : vector<8x8x128xf32> to vector<64x128xf32>
    %19 = arith.truncf %18 : vector<64x128xf32> to vector<64x128xbf16>
    %c0_17 = arith.constant 0 : index
    %c0_18 = arith.constant 0 : index
    %c0_19 = arith.constant 0 : index
    %20 = vector.load %arg4[%c0_17, %c0_18, %c0_19] : memref<9x128x128xbf16, #tpu.memory_space<vmem>>, vector<1x128x128xbf16>
    %21 = vector.shape_cast %20 : vector<1x128x128xbf16> to vector<128x128xbf16>
    %cst_20 = arith.constant dense<0.000000e+00> : vector<64x128xf32>
    %22 = tpu.matmul %19, %21, %cst_20 {dimension_numbers = #tpu.dot_dimension_numbers<[1], [0], [0], [1], [0, 0, 1, 1], [], []>} : vector<64x128xbf16>, vector<128x128xbf16>, vector<64x128xf32> -> vector<64x128xf32>
    %23 = arith.addf %16, %22 : vector<64x128xf32>
    %c0_21 = arith.constant 0 : index
    %c1_22 = arith.constant 1 : index
    %c0_23 = arith.constant 0 : index
    %24 = vector.load %arg7[%c0_21, %c1_22, %c0_23] : memref<10x10x128xf32, #tpu.memory_space<vmem>>, vector<8x8x128xf32>
    %25 = vector.shape_cast %24 : vector<8x8x128xf32> to vector<64x128xf32>
    %26 = arith.truncf %25 : vector<64x128xf32> to vector<64x128xbf16>
    %c1_24 = arith.constant 1 : index
    %c0_25 = arith.constant 0 : index
    %c0_26 = arith.constant 0 : index
    %27 = vector.load %arg4[%c1_24, %c0_25, %c0_26] : memref<9x128x128xbf16, #tpu.memory_space<vmem>>, vector<1x128x128xbf16>
    %28 = vector.shape_cast %27 : vector<1x128x128xbf16> to vector<128x128xbf16>
    %cst_27 = arith.constant dense<0.000000e+00> : vector<64x128xf32>
    %29 = tpu.matmul %26, %28, %cst_27 {dimension_numbers = #tpu.dot_dimension_numbers<[1], [0], [0], [1], [0, 0, 1, 1], [], []>} : vector<64x128xbf16>, vector<128x128xbf16>, vector<64x128xf32> -> vector<64x128xf32>
    %30 = arith.addf %23, %29 : vector<64x128xf32>
    %c0_28 = arith.constant 0 : index
    %c2 = arith.constant 2 : index
    %c0_29 = arith.constant 0 : index
    %31 = vector.load %arg7[%c0_28, %c2, %c0_29] : memref<10x10x128xf32, #tpu.memory_space<vmem>>, vector<8x8x128xf32>
    %32 = vector.shape_cast %31 : vector<8x8x128xf32> to vector<64x128xf32>
    %33 = arith.truncf %32 : vector<64x128xf32> to vector<64x128xbf16>
    %c2_30 = arith.constant 2 : index
    %c0_31 = arith.constant 0 : index
    %c0_32 = arith.constant 0 : index
    %34 = vector.load %arg4[%c2_30, %c0_31, %c0_32] : memref<9x128x128xbf16, #tpu.memory_space<vmem>>, vector<1x128x128xbf16>
    %35 = vector.shape_cast %34 : vector<1x128x128xbf16> to vector<128x128xbf16>
    %cst_33 = arith.constant dense<0.000000e+00> : vector<64x128xf32>
    %36 = tpu.matmul %33, %35, %cst_33 {dimension_numbers = #tpu.dot_dimension_numbers<[1], [0], [0], [1], [0, 0, 1, 1], [], []>} : vector<64x128xbf16>, vector<128x128xbf16>, vector<64x128xf32> -> vector<64x128xf32>
    %37 = arith.addf %30, %36 : vector<64x128xf32>
    %c1_34 = arith.constant 1 : index
    %c0_35 = arith.constant 0 : index
    %c0_36 = arith.constant 0 : index
    %38 = vector.load %arg7[%c1_34, %c0_35, %c0_36] : memref<10x10x128xf32, #tpu.memory_space<vmem>>, vector<8x8x128xf32>
    %39 = vector.shape_cast %38 : vector<8x8x128xf32> to vector<64x128xf32>
    %40 = arith.truncf %39 : vector<64x128xf32> to vector<64x128xbf16>
    %c3 = arith.constant 3 : index
    %c0_37 = arith.constant 0 : index
    %c0_38 = arith.constant 0 : index
    %41 = vector.load %arg4[%c3, %c0_37, %c0_38] : memref<9x128x128xbf16, #tpu.memory_space<vmem>>, vector<1x128x128xbf16>
    %42 = vector.shape_cast %41 : vector<1x128x128xbf16> to vector<128x128xbf16>
    %cst_39 = arith.constant dense<0.000000e+00> : vector<64x128xf32>
    %43 = tpu.matmul %40, %42, %cst_39 {dimension_numbers = #tpu.dot_dimension_numbers<[1], [0], [0], [1], [0, 0, 1, 1], [], []>} : vector<64x128xbf16>, vector<128x128xbf16>, vector<64x128xf32> -> vector<64x128xf32>
    %44 = arith.addf %37, %43 : vector<64x128xf32>
    %c1_40 = arith.constant 1 : index
    %c1_41 = arith.constant 1 : index
    %c0_42 = arith.constant 0 : index
    %45 = vector.load %arg7[%c1_40, %c1_41, %c0_42] : memref<10x10x128xf32, #tpu.memory_space<vmem>>, vector<8x8x128xf32>
    %46 = vector.shape_cast %45 : vector<8x8x128xf32> to vector<64x128xf32>
    %47 = arith.truncf %46 : vector<64x128xf32> to vector<64x128xbf16>
    %c4 = arith.constant 4 : index
    %c0_43 = arith.constant 0 : index
    %c0_44 = arith.constant 0 : index
    %48 = vector.load %arg4[%c4, %c0_43, %c0_44] : memref<9x128x128xbf16, #tpu.memory_space<vmem>>, vector<1x128x128xbf16>
    %49 = vector.shape_cast %48 : vector<1x128x128xbf16> to vector<128x128xbf16>
    %cst_45 = arith.constant dense<0.000000e+00> : vector<64x128xf32>
    %50 = tpu.matmul %47, %49, %cst_45 {dimension_numbers = #tpu.dot_dimension_numbers<[1], [0], [0], [1], [0, 0, 1, 1], [], []>} : vector<64x128xbf16>, vector<128x128xbf16>, vector<64x128xf32> -> vector<64x128xf32>
    %51 = arith.addf %44, %50 : vector<64x128xf32>
    %c1_46 = arith.constant 1 : index
    %c2_47 = arith.constant 2 : index
    %c0_48 = arith.constant 0 : index
    %52 = vector.load %arg7[%c1_46, %c2_47, %c0_48] : memref<10x10x128xf32, #tpu.memory_space<vmem>>, vector<8x8x128xf32>
    %53 = vector.shape_cast %52 : vector<8x8x128xf32> to vector<64x128xf32>
    %54 = arith.truncf %53 : vector<64x128xf32> to vector<64x128xbf16>
    %c5 = arith.constant 5 : index
    %c0_49 = arith.constant 0 : index
    %c0_50 = arith.constant 0 : index
    %55 = vector.load %arg4[%c5, %c0_49, %c0_50] : memref<9x128x128xbf16, #tpu.memory_space<vmem>>, vector<1x128x128xbf16>
    %56 = vector.shape_cast %55 : vector<1x128x128xbf16> to vector<128x128xbf16>
    %cst_51 = arith.constant dense<0.000000e+00> : vector<64x128xf32>
    %57 = tpu.matmul %54, %56, %cst_51 {dimension_numbers = #tpu.dot_dimension_numbers<[1], [0], [0], [1], [0, 0, 1, 1], [], []>} : vector<64x128xbf16>, vector<128x128xbf16>, vector<64x128xf32> -> vector<64x128xf32>
    %58 = arith.addf %51, %57 : vector<64x128xf32>
    %c2_52 = arith.constant 2 : index
    %c0_53 = arith.constant 0 : index
    %c0_54 = arith.constant 0 : index
    %59 = vector.load %arg7[%c2_52, %c0_53, %c0_54] : memref<10x10x128xf32, #tpu.memory_space<vmem>>, vector<8x8x128xf32>
    %60 = vector.shape_cast %59 : vector<8x8x128xf32> to vector<64x128xf32>
    %61 = arith.truncf %60 : vector<64x128xf32> to vector<64x128xbf16>
    %c6 = arith.constant 6 : index
    %c0_55 = arith.constant 0 : index
    %c0_56 = arith.constant 0 : index
    %62 = vector.load %arg4[%c6, %c0_55, %c0_56] : memref<9x128x128xbf16, #tpu.memory_space<vmem>>, vector<1x128x128xbf16>
    %63 = vector.shape_cast %62 : vector<1x128x128xbf16> to vector<128x128xbf16>
    %cst_57 = arith.constant dense<0.000000e+00> : vector<64x128xf32>
    %64 = tpu.matmul %61, %63, %cst_57 {dimension_numbers = #tpu.dot_dimension_numbers<[1], [0], [0], [1], [0, 0, 1, 1], [], []>} : vector<64x128xbf16>, vector<128x128xbf16>, vector<64x128xf32> -> vector<64x128xf32>
    %65 = arith.addf %58, %64 : vector<64x128xf32>
    %c2_58 = arith.constant 2 : index
    %c1_59 = arith.constant 1 : index
    %c0_60 = arith.constant 0 : index
    %66 = vector.load %arg7[%c2_58, %c1_59, %c0_60] : memref<10x10x128xf32, #tpu.memory_space<vmem>>, vector<8x8x128xf32>
    %67 = vector.shape_cast %66 : vector<8x8x128xf32> to vector<64x128xf32>
    %68 = arith.truncf %67 : vector<64x128xf32> to vector<64x128xbf16>
    %c7 = arith.constant 7 : index
    %c0_61 = arith.constant 0 : index
    %c0_62 = arith.constant 0 : index
    %69 = vector.load %arg4[%c7, %c0_61, %c0_62] : memref<9x128x128xbf16, #tpu.memory_space<vmem>>, vector<1x128x128xbf16>
    %70 = vector.shape_cast %69 : vector<1x128x128xbf16> to vector<128x128xbf16>
    %cst_63 = arith.constant dense<0.000000e+00> : vector<64x128xf32>
    %71 = tpu.matmul %68, %70, %cst_63 {dimension_numbers = #tpu.dot_dimension_numbers<[1], [0], [0], [1], [0, 0, 1, 1], [], []>} : vector<64x128xbf16>, vector<128x128xbf16>, vector<64x128xf32> -> vector<64x128xf32>
    %72 = arith.addf %65, %71 : vector<64x128xf32>
    %c2_64 = arith.constant 2 : index
    %c2_65 = arith.constant 2 : index
    %c0_66 = arith.constant 0 : index
    %73 = vector.load %arg7[%c2_64, %c2_65, %c0_66] : memref<10x10x128xf32, #tpu.memory_space<vmem>>, vector<8x8x128xf32>
    %74 = vector.shape_cast %73 : vector<8x8x128xf32> to vector<64x128xf32>
    %75 = arith.truncf %74 : vector<64x128xf32> to vector<64x128xbf16>
    %c8 = arith.constant 8 : index
    %c0_67 = arith.constant 0 : index
    %c0_68 = arith.constant 0 : index
    %76 = vector.load %arg4[%c8, %c0_67, %c0_68] : memref<9x128x128xbf16, #tpu.memory_space<vmem>>, vector<1x128x128xbf16>
    %77 = vector.shape_cast %76 : vector<1x128x128xbf16> to vector<128x128xbf16>
    %cst_69 = arith.constant dense<0.000000e+00> : vector<64x128xf32>
    %78 = tpu.matmul %75, %77, %cst_69 {dimension_numbers = #tpu.dot_dimension_numbers<[1], [0], [0], [1], [0, 0, 1, 1], [], []>} : vector<64x128xbf16>, vector<128x128xbf16>, vector<64x128xf32> -> vector<64x128xf32>
    %79 = arith.addf %72, %78 : vector<64x128xf32>
    %80 = vector.shape_cast %79 : vector<64x128xf32> to vector<8x8x128xf32>
    %81 = arith.truncf %80 : vector<8x8x128xf32> to vector<8x8x128xbf16>
    %c0_70 = arith.constant 0 : index
    %c0_71 = arith.constant 0 : index
    %c0_72 = arith.constant 0 : index
    %c0_73 = arith.constant 0 : index
    %82 = vector.load %arg5[%c0_70, %c0_71, %c0_72, %c0_73] : memref<1x8x8x128xbf16, #tpu.memory_space<vmem>>, vector<1x8x8x128xbf16>
    %83 = vector.shape_cast %82 : vector<1x8x8x128xbf16> to vector<8x8x128xbf16>
    %84 = vector.shape_cast %81 : vector<8x8x128xbf16> to vector<1x8x8x128xbf16>
    tpu.vector_store %arg5[%c0_70, %c0_71, %c0_72, %c0_73], %84 {strides = array<i32>} : memref<1x8x8x128xbf16, #tpu.memory_space<vmem>>, vector<1x8x8x128xbf16>,
    %cst_74 = arith.constant dense<0.000000e+00> : vector<128xf32>
    %85 = vector.multi_reduction <add>, %79, %cst_74 [0] : vector<64x128xf32> to vector<128xf32>
    %86 = vector.shape_cast %85 : vector<128xf32> to vector<1x128xf32>
    %87 = vector.shape_cast %86 : vector<1x128xf32> to vector<1x1x128xf32>
    %c0_75 = arith.constant 0 : index
    %c0_76 = arith.constant 0 : index
    %c0_77 = arith.constant 0 : index
    %88 = vector.load %arg6[%c0_75, %c0_76, %c0_77] : memref<1x2x128xf32, #tpu.memory_space<vmem>>, vector<1x1x128xf32>
    tpu.vector_store %arg6[%c0_75, %c0_76, %c0_77], %87 {strides = array<i32>} : memref<1x2x128xf32, #tpu.memory_space<vmem>>, vector<1x1x128xf32>,
    %89 = arith.mulf %79, %79 : vector<64x128xf32>
    %cst_78 = arith.constant dense<0.000000e+00> : vector<128xf32>
    %90 = vector.multi_reduction <add>, %89, %cst_78 [0] : vector<64x128xf32> to vector<128xf32>
    %91 = vector.shape_cast %90 : vector<128xf32> to vector<1x128xf32>
    %92 = vector.shape_cast %91 : vector<1x128xf32> to vector<1x1x128xf32>
    %c0_79 = arith.constant 0 : index
    %c1_80 = arith.constant 1 : index
    %c0_81 = arith.constant 0 : index
    %93 = vector.load %arg6[%c0_79, %c1_80, %c0_81] : memref<1x2x128xf32, #tpu.memory_space<vmem>>, vector<1x1x128xf32>
    tpu.vector_store %arg6[%c0_79, %c1_80, %c0_81], %92 {strides = array<i32>} : memref<1x2x128xf32, #tpu.memory_space<vmem>>, vector<1x1x128xf32>,
    return
  }
  func.func @transform_0(%arg0: i32) -> (i32, i32, i32, i32) {
    %c0_i32 = arith.constant 0 : i32
    %c0_i32_0 = arith.constant 0 : i32
    %c0_i32_1 = arith.constant 0 : i32
    %c0_i32_2 = arith.constant 0 : i32
    return %arg0, %c0_i32, %c0_i32_0, %c0_i32_1 : i32, i32, i32, i32
  }
  func.func @transform_1(%arg0: i32) -> (i32, i32) {
    %c0_i32 = arith.constant 0 : i32
    %c0_i32_0 = arith.constant 0 : i32
    %c0_i32_1 = arith.constant 0 : i32
    return %c0_i32, %c0_i32_0 : i32, i32
  }
  func.func @transform_2(%arg0: i32) -> (i32, i32) {
    %c0_i32 = arith.constant 0 : i32
    %c0_i32_0 = arith.constant 0 : i32
    %c0_i32_1 = arith.constant 0 : i32
    return %c0_i32, %c0_i32_0 : i32, i32
  }
  func.func @transform_3(%arg0: i32) -> (i32, i32, i32) {
    %c0_i32 = arith.constant 0 : i32
    %c0_i32_0 = arith.constant 0 : i32
    %c0_i32_1 = arith.constant 0 : i32
    %c0_i32_2 = arith.constant 0 : i32
    return %c0_i32, %c0_i32_0, %c0_i32_1 : i32, i32, i32
  }
  func.func @transform_4(%arg0: i32) -> (i32, i32, i32, i32) {
    %c0_i32 = arith.constant 0 : i32
    %c0_i32_0 = arith.constant 0 : i32
    %c0_i32_1 = arith.constant 0 : i32
    %c0_i32_2 = arith.constant 0 : i32
    return %arg0, %c0_i32, %c0_i32_0, %c0_i32_1 : i32, i32, i32, i32
  }
  func.func @transform_5(%arg0: i32) -> (i32, i32, i32) {
    %c0_i32 = arith.constant 0 : i32
    %c0_i32_0 = arith.constant 0 : i32
    %c0_i32_1 = arith.constant 0 : i32
    return %arg0, %c0_i32, %c0_i32_0 : i32, i32, i32
  }
}

module attributes {stable_mosaic.version = 11 : i64} {
  func.func @_bn_add_relu_kernel(%arg0: i32, %arg1: memref<128x128xbf16, #tpu.memory_space<vmem>>, %arg2: memref<1x128xf32, #tpu.memory_space<vmem>>, %arg3: memref<1x128xf32, #tpu.memory_space<vmem>>, %arg4: memref<128x128xf32, #tpu.memory_space<vmem>>, %arg5: memref<128x128xf32, #tpu.memory_space<vmem>>) attributes {dimension_semantics = [#tpu.dimension_semantics<parallel>], iteration_bounds = array<i64: 1>, scalar_prefetch = 0 : i64, scratch_operands = 0 : i64, tpu.core_type = #tpu.core_type<tc>, window_params = [{transform_indices = @transform_0, window_bounds = array<i64: 128, 128>}, {pipeline_mode = #tpu.pipeline_mode<synchronous>, transform_indices = @transform_1, window_bounds = array<i64: 1, 128>}, {pipeline_mode = #tpu.pipeline_mode<synchronous>, transform_indices = @transform_2, window_bounds = array<i64: 1, 128>}, {transform_indices = @transform_3, window_bounds = array<i64: 128, 128>}, {transform_indices = @transform_4, window_bounds = array<i64: 128, 128>}]} {
    %c0 = arith.constant 0 : index
    %c0_0 = arith.constant 0 : index
    %0 = vector.load %arg1[%c0, %c0_0] : memref<128x128xbf16, #tpu.memory_space<vmem>>, vector<128x128xbf16>
    %1 = arith.extf %0 : vector<128x128xbf16> to vector<128x128xf32>
    %c0_1 = arith.constant 0 : index
    %c0_2 = arith.constant 0 : index
    %2 = vector.load %arg2[%c0_1, %c0_2] : memref<1x128xf32, #tpu.memory_space<vmem>>, vector<1x128xf32>
    %3 = vector.broadcast %2 : vector<1x128xf32> to vector<128x128xf32>
    %4 = arith.mulf %1, %3 : vector<128x128xf32>
    %c0_3 = arith.constant 0 : index
    %c0_4 = arith.constant 0 : index
    %5 = vector.load %arg3[%c0_3, %c0_4] : memref<1x128xf32, #tpu.memory_space<vmem>>, vector<1x128xf32>
    %6 = vector.broadcast %5 : vector<1x128xf32> to vector<128x128xf32>
    %7 = arith.addf %4, %6 : vector<128x128xf32>
    %c0_5 = arith.constant 0 : index
    %c0_6 = arith.constant 0 : index
    %8 = vector.load %arg4[%c0_5, %c0_6] : memref<128x128xf32, #tpu.memory_space<vmem>>, vector<128x128xf32>
    %9 = arith.addf %7, %8 : vector<128x128xf32>
    %cst = arith.constant 0.000000e+00 : f32
    %10 = vector.broadcast %cst : f32 to vector<128x128xf32>
    %11 = arith.maximumf %9, %10 : vector<128x128xf32>
    %c0_7 = arith.constant 0 : index
    %c0_8 = arith.constant 0 : index
    %12 = vector.load %arg5[%c0_7, %c0_8] : memref<128x128xf32, #tpu.memory_space<vmem>>, vector<128x128xf32>
    tpu.vector_store %arg5[%c0_7, %c0_8], %11 {strides = array<i32>} : memref<128x128xf32, #tpu.memory_space<vmem>>, vector<128x128xf32>,
    return
  }
  func.func @transform_0(%arg0: i32) -> (i32, i32) {
    %c0_i32 = arith.constant 0 : i32
    %c0_i32_0 = arith.constant 0 : i32
    return %arg0, %c0_i32 : i32, i32
  }
  func.func @transform_1(%arg0: i32) -> (i32, i32) {
    %c0_i32 = arith.constant 0 : i32
    %c0_i32_0 = arith.constant 0 : i32
    %c0_i32_1 = arith.constant 0 : i32
    return %c0_i32, %c0_i32_0 : i32, i32
  }
  func.func @transform_2(%arg0: i32) -> (i32, i32) {
    %c0_i32 = arith.constant 0 : i32
    %c0_i32_0 = arith.constant 0 : i32
    %c0_i32_1 = arith.constant 0 : i32
    return %c0_i32, %c0_i32_0 : i32, i32
  }
  func.func @transform_3(%arg0: i32) -> (i32, i32) {
    %c0_i32 = arith.constant 0 : i32
    %c0_i32_0 = arith.constant 0 : i32
    return %arg0, %c0_i32 : i32, i32
  }
  func.func @transform_4(%arg0: i32) -> (i32, i32) {
    %c0_i32 = arith.constant 0 : i32
    %c0_i32_0 = arith.constant 0 : i32
    return %arg0, %c0_i32 : i32, i32
  }
}

module attributes {stable_mosaic.version = 11 : i64} {
  func.func @_matmul_stats_kernel(%arg0: i32, %arg1: memref<128x128xbf16, #tpu.memory_space<vmem>>, %arg2: memref<1x128xf32, #tpu.memory_space<vmem>>, %arg3: memref<1x128xf32, #tpu.memory_space<vmem>>, %arg4: memref<128x128xbf16, #tpu.memory_space<vmem>>, %arg5: memref<128x128xbf16, #tpu.memory_space<vmem>>, %arg6: memref<1x2x128xf32, #tpu.memory_space<vmem>>) attributes {dimension_semantics = [#tpu.dimension_semantics<parallel>], iteration_bounds = array<i64: 1>, scalar_prefetch = 0 : i64, scratch_operands = 0 : i64, tpu.core_type = #tpu.core_type<tc>, window_params = [{transform_indices = @transform_0, window_bounds = array<i64: 128, 128>}, {pipeline_mode = #tpu.pipeline_mode<synchronous>, transform_indices = @transform_1, window_bounds = array<i64: 1, 128>}, {pipeline_mode = #tpu.pipeline_mode<synchronous>, transform_indices = @transform_2, window_bounds = array<i64: 1, 128>}, {pipeline_mode = #tpu.pipeline_mode<synchronous>, transform_indices = @transform_3, window_bounds = array<i64: 128, 128>}, {transform_indices = @transform_4, window_bounds = array<i64: 128, 128>}, {transform_indices = @transform_5, window_bounds = array<i64: 1, 2, 128>}]} {
    %c0 = arith.constant 0 : index
    %c0_0 = arith.constant 0 : index
    %0 = vector.load %arg1[%c0, %c0_0] : memref<128x128xbf16, #tpu.memory_space<vmem>>, vector<128x128xbf16>
    %1 = arith.extf %0 : vector<128x128xbf16> to vector<128x128xf32>
    %c0_1 = arith.constant 0 : index
    %c0_2 = arith.constant 0 : index
    %2 = vector.load %arg2[%c0_1, %c0_2] : memref<1x128xf32, #tpu.memory_space<vmem>>, vector<1x128xf32>
    %3 = vector.broadcast %2 : vector<1x128xf32> to vector<128x128xf32>
    %4 = arith.mulf %1, %3 : vector<128x128xf32>
    %c0_3 = arith.constant 0 : index
    %c0_4 = arith.constant 0 : index
    %5 = vector.load %arg3[%c0_3, %c0_4] : memref<1x128xf32, #tpu.memory_space<vmem>>, vector<1x128xf32>
    %6 = vector.broadcast %5 : vector<1x128xf32> to vector<128x128xf32>
    %7 = arith.addf %4, %6 : vector<128x128xf32>
    %cst = arith.constant 0.000000e+00 : f32
    %8 = vector.broadcast %cst : f32 to vector<128x128xf32>
    %9 = arith.maximumf %7, %8 : vector<128x128xf32>
    %10 = arith.truncf %9 : vector<128x128xf32> to vector<128x128xbf16>
    %c0_5 = arith.constant 0 : index
    %c0_6 = arith.constant 0 : index
    %11 = vector.load %arg4[%c0_5, %c0_6] : memref<128x128xbf16, #tpu.memory_space<vmem>>, vector<128x128xbf16>
    %cst_7 = arith.constant dense<0.000000e+00> : vector<128x128xf32>
    %12 = tpu.matmul %10, %11, %cst_7 {dimension_numbers = #tpu.dot_dimension_numbers<[1], [0], [0], [1], [0, 0, 1, 1], [], []>} : vector<128x128xbf16>, vector<128x128xbf16>, vector<128x128xf32> -> vector<128x128xf32>
    %13 = arith.truncf %12 : vector<128x128xf32> to vector<128x128xbf16>
    %c0_8 = arith.constant 0 : index
    %c0_9 = arith.constant 0 : index
    %14 = vector.load %arg5[%c0_8, %c0_9] : memref<128x128xbf16, #tpu.memory_space<vmem>>, vector<128x128xbf16>
    tpu.vector_store %arg5[%c0_8, %c0_9], %13 {strides = array<i32>} : memref<128x128xbf16, #tpu.memory_space<vmem>>, vector<128x128xbf16>,
    %cst_10 = arith.constant dense<0.000000e+00> : vector<128xf32>
    %15 = vector.multi_reduction <add>, %12, %cst_10 [0] : vector<128x128xf32> to vector<128xf32>
    %16 = vector.shape_cast %15 : vector<128xf32> to vector<1x128xf32>
    %17 = vector.shape_cast %16 : vector<1x128xf32> to vector<1x1x128xf32>
    %c0_11 = arith.constant 0 : index
    %c0_12 = arith.constant 0 : index
    %c0_13 = arith.constant 0 : index
    %18 = vector.load %arg6[%c0_11, %c0_12, %c0_13] : memref<1x2x128xf32, #tpu.memory_space<vmem>>, vector<1x1x128xf32>
    tpu.vector_store %arg6[%c0_11, %c0_12, %c0_13], %17 {strides = array<i32>} : memref<1x2x128xf32, #tpu.memory_space<vmem>>, vector<1x1x128xf32>,
    %19 = arith.mulf %12, %12 : vector<128x128xf32>
    %cst_14 = arith.constant dense<0.000000e+00> : vector<128xf32>
    %20 = vector.multi_reduction <add>, %19, %cst_14 [0] : vector<128x128xf32> to vector<128xf32>
    %21 = vector.shape_cast %20 : vector<128xf32> to vector<1x128xf32>
    %22 = vector.shape_cast %21 : vector<1x128xf32> to vector<1x1x128xf32>
    %c0_15 = arith.constant 0 : index
    %c1 = arith.constant 1 : index
    %c0_16 = arith.constant 0 : index
    %23 = vector.load %arg6[%c0_15, %c1, %c0_16] : memref<1x2x128xf32, #tpu.memory_space<vmem>>, vector<1x1x128xf32>
    tpu.vector_store %arg6[%c0_15, %c1, %c0_16], %22 {strides = array<i32>} : memref<1x2x128xf32, #tpu.memory_space<vmem>>, vector<1x1x128xf32>,
    return
  }
  func.func @transform_0(%arg0: i32) -> (i32, i32) {
    %c0_i32 = arith.constant 0 : i32
    %c0_i32_0 = arith.constant 0 : i32
    return %arg0, %c0_i32 : i32, i32
  }
  func.func @transform_1(%arg0: i32) -> (i32, i32) {
    %c0_i32 = arith.constant 0 : i32
    %c0_i32_0 = arith.constant 0 : i32
    %c0_i32_1 = arith.constant 0 : i32
    return %c0_i32, %c0_i32_0 : i32, i32
  }
  func.func @transform_2(%arg0: i32) -> (i32, i32) {
    %c0_i32 = arith.constant 0 : i32
    %c0_i32_0 = arith.constant 0 : i32
    %c0_i32_1 = arith.constant 0 : i32
    return %c0_i32, %c0_i32_0 : i32, i32
  }
  func.func @transform_3(%arg0: i32) -> (i32, i32) {
    %c0_i32 = arith.constant 0 : i32
    %c0_i32_0 = arith.constant 0 : i32
    %c0_i32_1 = arith.constant 0 : i32
    return %c0_i32, %c0_i32_0 : i32, i32
  }
  func.func @transform_4(%arg0: i32) -> (i32, i32) {
    %c0_i32 = arith.constant 0 : i32
    %c0_i32_0 = arith.constant 0 : i32
    return %arg0, %c0_i32 : i32, i32
  }
  func.func @transform_5(%arg0: i32) -> (i32, i32, i32) {
    %c0_i32 = arith.constant 0 : i32
    %c0_i32_0 = arith.constant 0 : i32
    %c0_i32_1 = arith.constant 0 : i32
    return %arg0, %c0_i32, %c0_i32_0 : i32, i32, i32
  }
}

</mosaic_0001>

<bundles_post_ra>
// kernel: bottleneck_forward.7
= control target key start
LH: loop header
LB: loop body
LE: loop exit
PB: predicated region body
PF: predicated region fallthrough
CT: control target
= control target key end

     0   :  { %s387_s0 = inlined_call_operand.vmem [shape: bf16[128,128], index: 0, kind: input, shape index: {}]   ;;  %s388_s1 = inlined_call_operand.vmem [shape: f32[1,128], index: 1, kind: input, shape index: {}]   ;;  %s389_s2 = inlined_call_operand.vmem [shape: f32[1,128], index: 2, kind: input, shape index: {}]   ;;  %s390_s3 = inlined_call_operand.vmem [shape: f32[128,128], index: 3, kind: input, shape index: {}]   ;;  %s391_s4 = inlined_call_operand.hbm [shape: f32[128,128], index: 4, kind: output, shape index: {}]  }
   0x1   :  { %v173_v0 = vld [vmem:[%s387_s0] sm:$0xff]   ;;  %v204_v5 = vld [vmem:[%s387_s0 + $0x8] sm:$0xff]   ;;  %v205_v10 = vld [vmem:[%s387_s0 + $0x10] sm:$0xff]  }
   0x2   :  { %v276_v1 = vld [vmem:[%s388_s1] ss:$0 sm:$0xff]  ;;  %v174_v2 = vunpack.c.l.bf16 %v173_v0  ;;  %v175_v4 = vunpack.c.h.bf16 %v173_v0  ;;  %v178_v8 = vunpack.c.l.bf16 %v204_v5  ;;  %v179_v9 = vunpack.c.h.bf16 %v204_v5  ;;  %v91_v12 = vld [vmem:[%s390_s3 + $0x8] sm:$0xff]  ;;  %v206_v15 = vld [vmem:[%s387_s0 + $0x18] sm:$0xff]  }
   0x3   :  { %v281_v3 = vld [vmem:[%s389_s2] ss:$0 sm:$0xff]  ;;  %v182_v13 = vunpack.c.l.bf16 %v205_v10  ;;  %v183_v14 = vunpack.c.h.bf16 %v205_v10  ;;  %v92_v20 = vld [vmem:[%s390_s3 + $0x10] sm:$0xff]  ;;  %v93_v21 = vld [vmem:[%s390_s3 + $0x18] sm:$0xff]  ;;  %v186_v24 = vunpack.c.l.bf16 %v206_v15  ;;  %v187_v25 = vunpack.c.h.bf16 %v206_v15 }
   0x4   :  { %v54_v6 = vmul.f32 %v276_v1, %v174_v2  ;;  %v55_v7 = vmul.f32 %v276_v1, %v175_v4  ;;  %v90_v11 = vld [vmem:[%s390_s3] sm:$0xff]  ;;  %v56_v18 = vmul.f32 %v276_v1, %v178_v8  ;;  %v57_v19 = vmul.f32 %v276_v1, %v179_v9  ;;  %v95_v31 = vld [vmem:[%s390_s3 + $0x28] sm:$0xff]  ;;  %v96_v41 = vld [vmem:[%s390_s3 + $0x30] sm:$0xff] }
   0x5   :  { %v58_v22 = vmul.f32 %v276_v1, %v182_v13  ;;  %v59_v23 = vmul.f32 %v276_v1, %v183_v14  ;;  %v94_v30 = vld [vmem:[%s390_s3 + $0x20] sm:$0xff]  ;;  %v60_v34 = vmul.f32 %v276_v1, %v186_v24  ;;  %v61_v35 = vmul.f32 %v276_v1, %v187_v25  ;;  %v97_v42 = vld [vmem:[%s390_s3 + $0x38] sm:$0xff] }
   0x6   :  { %v74_v16 = vadd.f32 %v281_v3, %v54_v6  ;;  %v75_v17 = vadd.f32 %v281_v3, %v55_v7  ;;  %v76_v28 = vadd.f32 %v281_v3, %v56_v18  ;;  %v77_v29 = vadd.f32 %v281_v3, %v57_v19  ;;  %v207_v36 = vld [vmem:[%s387_s0 + $0x20] sm:$0xff]  }
   0x7   :  { %v78_v32 = vadd.f32 %v281_v3, %v58_v22  ;;  %v79_v33 = vadd.f32 %v281_v3, %v59_v23 }
   0x8   :  { %v106_v26 = vadd.f32 %v90_v11, %v74_v16  ;;  %v107_v27 = vadd.f32 %v91_v12, %v75_v17  ;;  %v108_v39 = vadd.f32 %v92_v20, %v76_v28  ;;  %v109_v40 = vadd.f32 %v93_v21, %v77_v29 }
   0xa   :  { %v122_v37 = vmax.f32 %v106_v26, 0.0  ;;  %v123_v38 = vmax.f32 %v107_v27, 0.0 }
   0xb   :  { %9 = vsyncpa [#allocation3], 0  ;;  %v110_v43 = vadd.f32 %v94_v30, %v78_v32  ;;  %v111_v44 = vadd.f32 %v95_v31, %v79_v33  ;;  %v80_v45 = vadd.f32 %v281_v3, %v60_v34  ;;  %v81_v46 = vadd.f32 %v281_v3, %v61_v35  ;;  %v208_v47 = vld [vmem:[%s387_s0 + $0x28] sm:$0xff]   ;;  %v209_v52 = vld [vmem:[%s387_s0 + $0x30] sm:$0xff]   ;;  %s242_s10 = smov [#allocation2]   ;;  %s243_s14 = smov 128  }
   0xc   :  { %138 = vst [vmem:[#allocation2] sm:$0xff] %v122_v37  ;;  %v124_v48 = vmax.f32 %v108_v39, 0.0  ;;  %v125_v49 = vmax.f32 %v109_v40, 0.0  ;;  %v190_v50 = vunpack.c.l.bf16 %v207_v36  ;;  %v191_v51 = vunpack.c.h.bf16 %v207_v36  ;;  %v210_v61 = vld [vmem:[%s387_s0 + $0x38] sm:$0xff]   ;;  %v98_v0 = vld [vmem:[%s390_s3 + $0x40] sm:$0xff]  ;;  %v99_v2 = vld [vmem:[%s390_s3 + $0x48] sm:$0xff] }
   0xd   :  { %139 = vst [vmem:[#allocation2 + $0x8] sm:$0xff] %v123_v38  ;;  %v126_v53 = vmax.f32 %v110_v43, 0.0  ;;  %v127_v54 = vmax.f32 %v111_v44, 0.0  ;;  %v112_v55 = vadd.f32 %v96_v41, %v80_v45  ;;  %v113_v56 = vadd.f32 %v97_v42, %v81_v46  ;;  %v100_v10 = vld [vmem:[%s390_s3 + $0x50] sm:$0xff]  ;;  %v101_v11 = vld [vmem:[%s390_s3 + $0x58] sm:$0xff]  ;;  %v102_v20 = vld [vmem:[%s390_s3 + $0x60] sm:$0xff] }
   0xe   :  { %140 = vst [vmem:[#allocation2 + $0x10] sm:$0xff] %v124_v48  ;;  %v62_v57 = vmul.f32 %v276_v1, %v190_v50  ;;  %v63_v58 = vmul.f32 %v276_v1, %v191_v51  ;;  %v194_v59 = vunpack.c.l.bf16 %v208_v47  ;;  %v195_v60 = vunpack.c.h.bf16 %v208_v47  ;;  %v103_v21 = vld [vmem:[%s390_s3 + $0x68] sm:$0xff]  ;;  %v104_v30 = vld [vmem:[%s390_s3 + $0x70] sm:$0xff]  ;;  %v105_v31 = vld [vmem:[%s390_s3 + $0x78] sm:$0xff]  ;;  %s158_s11 = sshll.u32 %s242_s10, 4  ;;  %s160_s3 = sshll.u32 %s391_s4, 4  ;;  %s159_s11 = int_to_ptr.vmem [resolvable:$true] %s158_s11  ;;  %s161_s3 = int_to_ptr.hbm [resolvable:$true] %s160_s3 }
   0xf   :  { %141 = vst [vmem:[#allocation2 + $0x18] sm:$0xff] %v125_v49  ;;  %v128_v62 = vmax.f32 %v112_v55, 0.0  ;;  %v129_v63 = vmax.f32 %v113_v56, 0.0  ;;  %v198_v4 = vunpack.c.l.bf16 %v209_v52  ;;  %v199_v5 = vunpack.c.h.bf16 %v209_v52  ;;  %s244_s15 = smov 8  }
  0x10   :  { %142 = vst [vmem:[#allocation2 + $0x20] sm:$0xff] %v126_v53  ;;  %v82_v6 = vadd.f32 %v281_v3, %v62_v57  ;;  %v83_v7 = vadd.f32 %v281_v3, %v63_v58  ;;  %v64_v8 = vmul.f32 %v276_v1, %v194_v59  ;;  %v65_v9 = vmul.f32 %v276_v1, %v195_v60 }
  0x11   :  { %143 = vst [vmem:[#allocation2 + $0x28] sm:$0xff] %v127_v54  ;;  %v66_v12 = vmul.f32 %v276_v1, %v198_v4  ;;  %v67_v13 = vmul.f32 %v276_v1, %v199_v5  ;;  %v202_v14 = vunpack.c.l.bf16 %v210_v61  ;;  %v203_v15 = vunpack.c.h.bf16 %v210_v61 }
  0x12   :  { %144 = vst [vmem:[#allocation2 + $0x30] sm:$0xff] %v128_v62  ;;  %v114_v16 = vadd.f32 %v98_v0, %v82_v6  ;;  %v115_v17 = vadd.f32 %v99_v2, %v83_v7  ;;  %v84_v18 = vadd.f32 %v281_v3, %v64_v8  ;;  %v85_v19 = vadd.f32 %v281_v3, %v65_v9 }
  0x13   :  { %145 = vst [vmem:[#allocation2 + $0x38] sm:$0xff] %v129_v63  ;;  %v86_v22 = vadd.f32 %v281_v3, %v66_v12  ;;  %v87_v23 = vadd.f32 %v281_v3, %v67_v13  ;;  %v68_v24 = vmul.f32 %v276_v1, %v202_v14  ;;  %v69_v25 = vmul.f32 %v276_v1, %v203_v15 }
  0x14   :  { %v130_v26 = vmax.f32 %v114_v16, 0.0  ;;  %v131_v27 = vmax.f32 %v115_v17, 0.0  ;;  %v116_v28 = vadd.f32 %v100_v10, %v84_v18  ;;  %v117_v29 = vadd.f32 %v101_v11, %v85_v19 }
  0x15   :  { %v118_v32 = vadd.f32 %v102_v20, %v86_v22  ;;  %v119_v33 = vadd.f32 %v103_v21, %v87_v23  ;;  %v88_v34 = vadd.f32 %v281_v3, %v68_v24  ;;  %v89_v35 = vadd.f32 %v281_v3, %v69_v25 }
  0x16   :  { %146 = vst [vmem:[#allocation2 + $0x40] sm:$0xff] %v130_v26  ;;  %v132_v1 = vmax.f32 %v116_v28, 0.0  ;;  %v133_v36 = vmax.f32 %v117_v29, 0.0 }
  0x17   :  { %147 = vst [vmem:[#allocation2 + $0x48] sm:$0xff] %v131_v27  ;;  %v134_v37 = vmax.f32 %v118_v32, 0.0  ;;  %v135_v38 = vmax.f32 %v119_v33, 0.0  ;;  %v120_v39 = vadd.f32 %v104_v30, %v88_v34  ;;  %v121_v40 = vadd.f32 %v105_v31, %v89_v35 }
  0x18   :  { %148 = vst [vmem:[#allocation2 + $0x50] sm:$0xff] %v132_v1 }
  0x19   :  { %149 = vst [vmem:[#allocation2 + $0x58] sm:$0xff] %v133_v36  ;;  %v136_v41 = vmax.f32 %v120_v39, 0.0  ;;  %v137_v42 = vmax.f32 %v121_v40, 0.0 }
  0x1a   :  { %150 = vst [vmem:[#allocation2 + $0x60] sm:$0xff] %v134_v37 }
  0x1b   :  { %151 = vst [vmem:[#allocation2 + $0x68] sm:$0xff] %v135_v38 }
  0x1c   :  { %152 = vst [vmem:[#allocation2 + $0x70] sm:$0xff] %v136_v41 }
  0x1d   :  { %153 = vst [vmem:[#allocation2 + $0x78] sm:$0xff] %v137_v42 }
  0x1e   :  { %166 = dma.vmem_to_hbm [thread:$0]  %s159_s11, 2048, %s161_s3, [#allocation3], %s243_s14, %s243_s14, %s244_s15  }
  0x1f   :  { %240 = dma.done.wait [#allocation3], 2048  }
  0x20   :  { %241 = vsyncadd [#allocation3], 4294965248 }
  0x21   :  { %171 = vsyncpa [#allocation3], 1 }

// kernel: bottleneck_forward.4
= control target key start
LH: loop header
LB: loop body
LE: loop exit
PB: predicated region body
PF: predicated region fallthrough
CT: control target
= control target key end

     0   :  { %s561_s1 = inlined_call_operand.vmem [shape: f32[1,128], index: 1, kind: input, shape index: {}]   ;;  %s562_s2 = inlined_call_operand.vmem [shape: f32[1,128], index: 2, kind: input, shape index: {}]   ;;  %s563_s3 = inlined_call_operand.vmem [shape: bf16[128,128], index: 3, kind: input, shape index: {}]   ;;  %s564_s0 = inlined_call_operand.vmem [shape: bf16[128,128], index: 0, kind: input, shape index: {}]   ;;  %s565_s4 = inlined_call_operand.vmem [shape: bf16[128,128], index: 4, kind: output, shape index: {0}]   ;;  %s566_s5 = inlined_call_operand.vmem [shape: f32[1,2,128], index: 5, kind: output, shape index: {1}]  }
   0x1   :  { %v375_v0 = vld [vmem:[%s563_s3 + $0x38] sm:$0xff]  ;;  %v374_v1 = vld [vmem:[%s563_s3 + $0x30] sm:$0xff]  ;;  %v373_v2 = vld [vmem:[%s563_s3 + $0x28] sm:$0xff] }
   0x2   :  { %147 = vmatpush.bf16.msra.mxu0 %v375_v0  ;;  %423 = vmatpush.bf16.msra.mxu1 %v375_v0  ;;  %v372_v3 = vld [vmem:[%s563_s3 + $0x20] sm:$0xff]  ;;  %v371_v4 = vld [vmem:[%s563_s3 + $0x18] sm:$0xff]  ;;  %v370_v5 = vld [vmem:[%s563_s3 + $0x10] sm:$0xff] }
   0x3   :  { %424 = vmatpush.bf16.msra.mxu2 %v375_v0  ;;  %425 = vmatpush.bf16.msra.mxu3 %v375_v0  ;;  %v369_v6 = vld [vmem:[%s563_s3 + $0x8] sm:$0xff]  ;;  %v368_v7 = vld [vmem:[%s563_s3] sm:$0xff]  ;;  %v362_v9 = vld [vmem:[%s564_s0 + $0x10] sm:$0xff] }
   0x4   :  { %v360_v8 = vld [vmem:[%s564_s0] sm:$0xff]  ;;  %v366_v11 = vld [vmem:[%s564_s0 + $0x30] sm:$0xff]  ;;  %v361_v12 = vld [vmem:[%s564_s0 + $0x8] sm:$0xff] }
   0x5   :  { %v364_v10 = vld [vmem:[%s564_s0 + $0x20] sm:$0xff]  ;;  %v363_v13 = vld [vmem:[%s564_s0 + $0x18] sm:$0xff]  ;;  %v365_v14 = vld [vmem:[%s564_s0 + $0x28] sm:$0xff] }
   0x6   :  { %148 = vmatpush.bf16.msra.mxu0 %v374_v1  ;;  %426 = vmatpush.bf16.msra.mxu1 %v374_v1  ;;  %v367_v15 = vld [vmem:[%s564_s0 + $0x38] sm:$0xff] }
   0x7   :  { %427 = vmatpush.bf16.msra.mxu2 %v374_v1  ;;  %428 = vmatpush.bf16.msra.mxu3 %v374_v1 }
   0xa   :  { %149 = vmatpush.bf16.msra.mxu0 %v373_v2  ;;  %429 = vmatpush.bf16.msra.mxu1 %v373_v2 }
   0xb   :  { %430 = vmatpush.bf16.msra.mxu2 %v373_v2  ;;  %431 = vmatpush.bf16.msra.mxu3 %v373_v2 }
   0xe   :  { %150 = vmatpush.bf16.msra.mxu0 %v372_v3  ;;  %432 = vmatpush.bf16.msra.mxu1 %v372_v3 }
   0xf   :  { %433 = vmatpush.bf16.msra.mxu2 %v372_v3  ;;  %434 = vmatpush.bf16.msra.mxu3 %v372_v3 }
  0x12   :  { %151 = vmatpush.bf16.msra.mxu0 %v371_v4  ;;  %435 = vmatpush.bf16.msra.mxu1 %v371_v4 }
  0x13   :  { %436 = vmatpush.bf16.msra.mxu2 %v371_v4  ;;  %437 = vmatpush.bf16.msra.mxu3 %v371_v4 }
  0x16   :  { %152 = vmatpush.bf16.msra.mxu0 %v370_v5  ;;  %438 = vmatpush.bf16.msra.mxu1 %v370_v5 }
  0x17   :  { %439 = vmatpush.bf16.msra.mxu2 %v370_v5  ;;  %440 = vmatpush.bf16.msra.mxu3 %v370_v5 }
  0x1a   :  { %153 = vmatpush.bf16.msra.mxu0 %v369_v6  ;;  %441 = vmatpush.bf16.msra.mxu1 %v369_v6 }
  0x1b   :  { %442 = vmatpush.bf16.msra.mxu2 %v369_v6  ;;  %443 = vmatpush.bf16.msra.mxu3 %v369_v6 }
  0x1e   :  { %154 = vmatpush.bf16.msra.mxu0 %v368_v7  ;;  %444 = vmatpush.bf16.msra.mxu1 %v368_v7 }
  0x1f   :  { %445 = vmatpush.bf16.msra.mxu2 %v368_v7  ;;  %446 = vmatpush.bf16.msra.mxu3 %v368_v7 }
  0x21   :  { %155 = vmatmul.bf16.vlgmr.msra.gmra.mxu0 %v360_v8  ;;  %165 = vmatmul.bf16.vlgmr.msra.gmra.mxu1 %v362_v9 }
  0x22   :  { %175 = vmatmul.bf16.vlgmr.msra.gmra.mxu2 %v364_v10  ;;  %185 = vmatmul.bf16.vlgmr.msra.gmra.mxu3 %v366_v11 }
  0x31   :  { %160 = vmatmul.bf16.gmra.mxu0 %v361_v12  ;;  %170 = vmatmul.bf16.gmra.mxu1 %v363_v13 }
  0x32   :  { %180 = vmatmul.bf16.gmra.mxu2 %v365_v14  ;;  %190 = vmatmul.bf16.gmra.mxu3 %v367_v15 }
  0x9e   :  { %v156_v16 = vpop.f32.mrf.mxu0  ;;  %v166_v17 = vpop.f32.mrf.mxu1 }
  0x9f   :  { %v250_v31 = vmul.f32 %v156_v16, %v156_v16  ;;  %v254_v45 = vmul.f32 %v166_v17, %v166_v17 }
  0xa5   :  { %v176_v18 = vpop.f32.mrf.mxu2  ;;  %v525_v19 = vpop.f32.mrf.mxu3 }
  0xa6   :  { %v158_v20 = vpop.f32.mrf.mxu0  ;;  %v168_v21 = vpop.f32.mrf.mxu1  ;;  %v258_v61 = vmul.f32 %v176_v18, %v176_v18  ;;  %v262_v9 = vmul.f32 %v525_v19, %v525_v19 }
  0xa7   :  { %v379_v22 = vpack.c.bf16 %v158_v20, %v156_v16  ;;  %v389_v23 = vpack.c.bf16 %v168_v21, %v166_v17  ;;  %v251_v30 = vmul.f32 %v158_v20, %v158_v20  ;;  %v228_v33 = vadd.f32 %v158_v20, %v156_v16 }
  0xa8   :  { %v255_v48 = vmul.f32 %v168_v21, %v168_v21 }
  0xa9   :  { %380 = vst [vmem:[%s565_s4] sm:$0xff] %v379_v22   ;;  %v266_v34 = vadd.f32 %v251_v30, %v250_v31 }
  0xaa   :  { %417 = vst [vmem:[%s565_s4 + $0x10] sm:$0xff] %v389_v23  }
  0xad   :  { %v178_v24 = vpop.f32.mrf.mxu2  ;;  %v188_v25 = vpop.f32.mrf.mxu3 }
  0xae   :  { %v161_v26 = vpop.f32.mrf.mxu0  ;;  %v171_v27 = vpop.f32.mrf.mxu1  ;;  %v399_v28 = vpack.c.bf16 %v178_v24, %v176_v18  ;;  %v409_v29 = vpack.c.bf16 %v188_v25, %v525_v19  ;;  %v259_v0 = vmul.f32 %v178_v24, %v178_v24  ;;  %v263_v12 = vmul.f32 %v188_v25, %v188_v25 }
  0xaf   :  { %v252_v32 = vmul.f32 %v161_v26, %v161_v26  ;;  %v229_v35 = vadd.f32 %v228_v33, %v161_v26  ;;  %v256_v51 = vmul.f32 %v171_v27, %v171_v27 }
  0xb0   :  { %419 = vst [vmem:[%s565_s4 + $0x20] sm:$0xff] %v399_v28  }
  0xb1   :  { %421 = vst [vmem:[%s565_s4 + $0x30] sm:$0xff] %v409_v29   ;;  %v267_v38 = vadd.f32 %v266_v34, %v252_v32 }
  0xb5   :  { %v181_v36 = vpop.f32.mrf.mxu2  ;;  %v191_v37 = vpop.f32.mrf.mxu3 }
  0xb6   :  { %v163_v39 = vpop.f32.mrf.mxu0  ;;  %v173_v40 = vpop.f32.mrf.mxu1  ;;  %v260_v4 = vmul.f32 %v181_v36, %v181_v36  ;;  %v264_v16 = vmul.f32 %v191_v37, %v191_v37 }
  0xb7   :  { %v384_v41 = vpack.c.bf16 %v163_v39, %v161_v26  ;;  %v230_v42 = vadd.f32 %v229_v35, %v163_v39  ;;  %v253_v43 = vmul.f32 %v163_v39, %v163_v39  ;;  %v394_v44 = vpack.c.bf16 %v173_v40, %v171_v27 }
  0xb8   :  { %v257_v59 = vmul.f32 %v173_v40, %v173_v40 }
  0xb9   :  { %416 = vst [vmem:[%s565_s4 + $0x8] sm:$0xff] %v384_v41   ;;  %v231_v46 = vadd.f32 %v230_v42, %v166_v17  ;;  %v268_v47 = vadd.f32 %v267_v38, %v253_v43 }
  0xba   :  { %418 = vst [vmem:[%s565_s4 + $0x18] sm:$0xff] %v394_v44  }
  0xbb   :  { %v269_v49 = vadd.f32 %v268_v47, %v254_v45  ;;  %v232_v50 = vadd.f32 %v231_v46, %v168_v21 }
  0xbd   :  { %v233_v52 = vadd.f32 %v232_v50, %v171_v27  ;;  %v270_v53 = vadd.f32 %v269_v49, %v255_v48  ;;  %v183_v54 = vpop.f32.mrf.mxu2  ;;  %v193_v55 = vpop.f32.mrf.mxu3 }
  0xbe   :  { %v404_v56 = vpack.c.bf16 %v183_v54, %v181_v36  ;;  %v414_v57 = vpack.c.bf16 %v193_v55, %v191_v37  ;;  %v261_v8 = vmul.f32 %v183_v54, %v183_v54  ;;  %v265_v21 = vmul.f32 %v193_v55, %v193_v55 }
  0xbf   :  { %v234_v58 = vadd.f32 %v233_v52, %v173_v40  ;;  %v271_v60 = vadd.f32 %v270_v53, %v256_v51 }
  0xc0   :  { %420 = vst [vmem:[%s565_s4 + $0x28] sm:$0xff] %v404_v56  }
  0xc1   :  { %v235_v62 = vadd.f32 %v234_v58, %v176_v18  ;;  %v272_v63 = vadd.f32 %v271_v60, %v257_v59  ;;  %422 = vst [vmem:[%s565_s4 + $0x38] sm:$0xff] %v414_v57  }
  0xc3   :  { %v273_v1 = vadd.f32 %v272_v63, %v258_v61  ;;  %v236_v2 = vadd.f32 %v235_v62, %v178_v24 }
  0xc5   :  { %v237_v3 = vadd.f32 %v236_v2, %v181_v36  ;;  %v274_v5 = vadd.f32 %v273_v1, %v259_v0 }
  0xc7   :  { %v275_v6 = vadd.f32 %v274_v5, %v260_v4  ;;  %v238_v7 = vadd.f32 %v237_v3, %v183_v54 }
  0xc9   :  { %v239_v10 = vadd.f32 %v238_v7, %v525_v19  ;;  %v276_v11 = vadd.f32 %v275_v6, %v261_v8 }
  0xcb   :  { %v277_v13 = vadd.f32 %v276_v11, %v262_v9  ;;  %v240_v14 = vadd.f32 %v239_v10, %v188_v25 }
  0xcd   :  { %v241_v15 = vadd.f32 %v240_v14, %v191_v37  ;;  %v278_v17 = vadd.f32 %v277_v13, %v263_v12 }
  0xcf   :  { %v279_v18 = vadd.f32 %v278_v17, %v264_v16  ;;  %v242_v20 = vadd.f32 %v241_v15, %v193_v55 }
  0xd1   :  { %v243_v22 = vrot.slane %v242_v20, 4  ;;  %v280_v23 = vadd.f32 %v279_v18, %v265_v21 }
  0xd3   :  { %v244_v24 = vadd.f32 %v243_v22, %v242_v20  ;;  %v281_v26 = vrot.slane %v280_v23, 4 }
  0xd5   :  { %v245_v27 = vrot.slane %v244_v24, 2  ;;  %v282_v28 = vadd.f32 %v281_v26, %v280_v23 }
  0xd7   :  { %v246_v29 = vadd.f32 %v245_v27, %v244_v24  ;;  %v283_v30 = vrot.slane %v282_v28, 2 }
  0xd9   :  { %v247_v31 = vrot.slane %v246_v29, 1  ;;  %v284_v19 = vadd.f32 %v283_v30, %v282_v28 }
  0xdb   :  { %v248_v32 = vadd.f32 %v247_v31, %v246_v29  ;;  %v285_v33 = vrot.slane %v284_v19, 1 }
  0xdd   :  { %249 = vst [vmem:[%s566_s5] sm:$0x1] %v248_v32  ;;  %v286_v25 = vadd.f32 %v285_v33, %v284_v19 }
  0xdf   :  { %287 = vst [vmem:[%s566_s5 + $0x1] sm:$0x1] %v286_v25 }

// kernel: bottleneck_forward.6
= control target key start
LH: loop header
LB: loop body
LE: loop exit
PB: predicated region body
PF: predicated region fallthrough
CT: control target
= control target key end

     0   :  { %s636_s3 = inlined_call_operand.vmem [shape: bf16[128,128], index: 3, kind: input, shape index: {}]   ;;  %s637_s1 = inlined_call_operand.vmem [shape: f32[1,128], index: 1, kind: input, shape index: {}]   ;;  %s638_s2 = inlined_call_operand.vmem [shape: f32[1,128], index: 2, kind: input, shape index: {}]   ;;  %s639_s0 = inlined_call_operand.vmem [shape: bf16[128,128], index: 0, kind: input, shape index: {}]   ;;  %s640_s4 = inlined_call_operand.vmem [shape: bf16[128,128], index: 4, kind: output, shape index: {0}]   ;;  %s641_s5 = inlined_call_operand.vmem [shape: f32[1,2,128], index: 5, kind: output, shape index: {1}]  }
   0x1   :  { %v367_v0 = vld [vmem:[%s636_s3 + $0x38] sm:$0xff]  ;;  %v366_v1 = vld [vmem:[%s636_s3 + $0x30] sm:$0xff]  ;;  %v365_v2 = vld [vmem:[%s636_s3 + $0x28] sm:$0xff] }
   0x2   :  { %179 = vmatpush.bf16.msra.mxu0 %v367_v0  ;;  %454 = vmatpush.bf16.msra.mxu1 %v367_v0  ;;  %v369_v3 = vld [vmem:[%s639_s0] sm:$0xff]   ;;  %v441_v5 = vld [vmem:[%s639_s0 + $0x10] sm:$0xff]   ;;  %v363_v15 = vld [vmem:[%s636_s3 + $0x18] sm:$0xff] }
   0x3   :  { %455 = vmatpush.bf16.msra.mxu2 %v367_v0  ;;  %456 = vmatpush.bf16.msra.mxu3 %v367_v0  ;;  %v364_v4 = vld [vmem:[%s636_s3 + $0x20] sm:$0xff]  ;;  %v445_v7 = vld [vmem:[%s639_s0 + $0x30] sm:$0xff]   ;;  %v370_v8 = vunpack.c.l.bf16 %v369_v3  ;;  %v371_v9 = vunpack.c.h.bf16 %v369_v3  ;;  %v378_v11 = vunpack.c.l.bf16 %v441_v5  ;;  %v379_v12 = vunpack.c.h.bf16 %v441_v5  ;;  %v361_v34 = vld [vmem:[%s636_s3 + $0x8] sm:$0xff] }
   0x4   :  { %v443_v6 = vld [vmem:[%s639_s0 + $0x20] sm:$0xff]   ;;  %v394_v16 = vunpack.c.l.bf16 %v445_v7  ;;  %v395_v17 = vunpack.c.h.bf16 %v445_v7  ;;  %v362_v25 = vld [vmem:[%s636_s3 + $0x10] sm:$0xff]  ;;  %v440_v43 = vld [vmem:[%s639_s0 + $0x8] sm:$0xff]  }
   0x5   :  { %v537_v10 = vld [vmem:[%s637_s1] ss:$0 sm:$0xff]  ;;  %v386_v13 = vunpack.c.l.bf16 %v443_v6  ;;  %v387_v14 = vunpack.c.h.bf16 %v443_v6  ;;  %v442_v44 = vld [vmem:[%s639_s0 + $0x18] sm:$0xff]   ;;  %v444_v48 = vld [vmem:[%s639_s0 + $0x28] sm:$0xff]   ;;  %v374_v51 = vunpack.c.l.bf16 %v440_v43  ;;  %v375_v52 = vunpack.c.h.bf16 %v440_v43 }
   0x6   :  { %180 = vmatpush.bf16.msra.mxu0 %v366_v1  ;;  %457 = vmatpush.bf16.msra.mxu1 %v366_v1  ;;  %v55_v18 = vmul.f32 %v537_v10, %v370_v8  ;;  %v56_v19 = vmul.f32 %v537_v10, %v371_v9  ;;  %v547_v20 = vld [vmem:[%s638_s2] ss:$0 sm:$0xff]  ;;  %v59_v21 = vmul.f32 %v537_v10, %v378_v11  ;;  %v446_v49 = vld [vmem:[%s639_s0 + $0x38] sm:$0xff]   ;;  %v382_v53 = vunpack.c.l.bf16 %v442_v44 }
   0x7   :  { %458 = vmatpush.bf16.msra.mxu2 %v366_v1  ;;  %459 = vmatpush.bf16.msra.mxu3 %v366_v1  ;;  %v60_v22 = vmul.f32 %v537_v10, %v379_v12  ;;  %v63_v23 = vmul.f32 %v537_v10, %v386_v13  ;;  %v64_v24 = vmul.f32 %v537_v10, %v387_v14  ;;  %v360_v45 = vld [vmem:[%s636_s3] sm:$0xff]  ;;  %v383_v56 = vunpack.c.h.bf16 %v442_v44 }
   0x8   :  { %v67_v26 = vmul.f32 %v537_v10, %v394_v16  ;;  %v68_v27 = vmul.f32 %v537_v10, %v395_v17  ;;  %v75_v28 = vadd.f32 %v547_v20, %v55_v18  ;;  %v76_v29 = vadd.f32 %v547_v20, %v56_v19 }
   0x9   :  { %v79_v30 = vadd.f32 %v547_v20, %v59_v21  ;;  %v80_v31 = vadd.f32 %v547_v20, %v60_v22  ;;  %v83_v32 = vadd.f32 %v547_v20, %v63_v23  ;;  %v84_v33 = vadd.f32 %v547_v20, %v64_v24 }
   0xa   :  { %181 = vmatpush.bf16.msra.mxu0 %v365_v2  ;;  %460 = vmatpush.bf16.msra.mxu1 %v365_v2  ;;  %v87_v35 = vadd.f32 %v547_v20, %v67_v26  ;;  %v88_v36 = vadd.f32 %v547_v20, %v68_v27  ;;  %v91_v37 = vmax.f32 %v75_v28, 0.0  ;;  %v92_v38 = vmax.f32 %v76_v29, 0.0 }
   0xb   :  { %461 = vmatpush.bf16.msra.mxu2 %v365_v2  ;;  %462 = vmatpush.bf16.msra.mxu3 %v365_v2  ;;  %v95_v39 = vmax.f32 %v79_v30, 0.0  ;;  %v96_v40 = vmax.f32 %v80_v31, 0.0  ;;  %v99_v41 = vmax.f32 %v83_v32, 0.0  ;;  %v100_v42 = vmax.f32 %v84_v33, 0.0 }
   0xc   :  { %v103_v46 = vmax.f32 %v87_v35, 0.0  ;;  %v104_v47 = vmax.f32 %v88_v36, 0.0  ;;  %v107_v50 = vpack.c.bf16 %v92_v38, %v91_v37  ;;  %v390_v57 = vunpack.c.l.bf16 %v444_v48 }
   0xd   :  { %v109_v54 = vpack.c.bf16 %v96_v40, %v95_v39  ;;  %v111_v55 = vpack.c.bf16 %v100_v42, %v99_v41  ;;  %v391_v59 = vunpack.c.h.bf16 %v444_v48  ;;  %v398_v60 = vunpack.c.l.bf16 %v446_v49 }
   0xe   :  { %182 = vmatpush.bf16.msra.mxu0 %v364_v4  ;;  %463 = vmatpush.bf16.msra.mxu1 %v364_v4  ;;  %v113_v58 = vpack.c.bf16 %v104_v47, %v103_v46  ;;  %v399_v61 = vunpack.c.h.bf16 %v446_v49  ;;  %v57_v62 = vmul.f32 %v537_v10, %v374_v51  ;;  %v58_v63 = vmul.f32 %v537_v10, %v375_v52 }
   0xf   :  { %464 = vmatpush.bf16.msra.mxu2 %v364_v4  ;;  %465 = vmatpush.bf16.msra.mxu3 %v364_v4  ;;  %v61_v0 = vmul.f32 %v537_v10, %v382_v53  ;;  %v62_v1 = vmul.f32 %v537_v10, %v383_v56  ;;  %v65_v2 = vmul.f32 %v537_v10, %v390_v57 }
  0x10   :  { %v66_v3 = vmul.f32 %v537_v10, %v391_v59  ;;  %v69_v4 = vmul.f32 %v537_v10, %v398_v60  ;;  %v70_v5 = vmul.f32 %v537_v10, %v399_v61  ;;  %v77_v6 = vadd.f32 %v547_v20, %v57_v62 }
  0x11   :  { %v78_v7 = vadd.f32 %v547_v20, %v58_v63  ;;  %v81_v8 = vadd.f32 %v547_v20, %v61_v0  ;;  %v82_v9 = vadd.f32 %v547_v20, %v62_v1  ;;  %v85_v11 = vadd.f32 %v547_v20, %v65_v2 }
  0x12   :  { %183 = vmatpush.bf16.msra.mxu0 %v363_v15  ;;  %466 = vmatpush.bf16.msra.mxu1 %v363_v15  ;;  %v86_v12 = vadd.f32 %v547_v20, %v66_v3  ;;  %v89_v13 = vadd.f32 %v547_v20, %v69_v4  ;;  %v90_v14 = vadd.f32 %v547_v20, %v70_v5 }
  0x13   :  { %467 = vmatpush.bf16.msra.mxu2 %v363_v15  ;;  %468 = vmatpush.bf16.msra.mxu3 %v363_v15  ;;  %v93_v15 = vmax.f32 %v77_v6, 0.0  ;;  %v94_v16 = vmax.f32 %v78_v7, 0.0  ;;  %v97_v17 = vmax.f32 %v81_v8, 0.0  ;;  %v98_v10 = vmax.f32 %v82_v9, 0.0 }
  0x14   :  { %v101_v18 = vmax.f32 %v85_v11, 0.0  ;;  %v102_v19 = vmax.f32 %v86_v12, 0.0  ;;  %v105_v21 = vmax.f32 %v89_v13, 0.0  ;;  %v106_v22 = vmax.f32 %v90_v14, 0.0 }
  0x15   :  { %v108_v23 = vpack.c.bf16 %v94_v16, %v93_v15  ;;  %v110_v24 = vpack.c.bf16 %v98_v10, %v97_v17 }
  0x16   :  { %184 = vmatpush.bf16.msra.mxu0 %v362_v25  ;;  %469 = vmatpush.bf16.msra.mxu1 %v362_v25  ;;  %v114_v26 = vpack.c.bf16 %v106_v22, %v105_v21 }
  0x17   :  { %470 = vmatpush.bf16.msra.mxu2 %v362_v25  ;;  %471 = vmatpush.bf16.msra.mxu3 %v362_v25  ;;  %v112_v25 = vpack.c.bf16 %v102_v19, %v101_v18 }
  0x1a   :  { %185 = vmatpush.bf16.msra.mxu0 %v361_v34  ;;  %472 = vmatpush.bf16.msra.mxu1 %v361_v34 }
  0x1b   :  { %473 = vmatpush.bf16.msra.mxu2 %v361_v34  ;;  %474 = vmatpush.bf16.msra.mxu3 %v361_v34 }
  0x1e   :  { %186 = vmatpush.bf16.msra.mxu0 %v360_v45  ;;  %475 = vmatpush.bf16.msra.mxu1 %v360_v45 }
  0x1f   :  { %476 = vmatpush.bf16.msra.mxu2 %v360_v45  ;;  %477 = vmatpush.bf16.msra.mxu3 %v360_v45 }
  0x21   :  { %187 = vmatmul.bf16.vlgmr.msra.gmra.mxu0 %v107_v50  ;;  %197 = vmatmul.bf16.vlgmr.msra.gmra.mxu1 %v109_v54 }
  0x22   :  { %207 = vmatmul.bf16.vlgmr.msra.gmra.mxu2 %v111_v55  ;;  %217 = vmatmul.bf16.vlgmr.msra.gmra.mxu3 %v113_v58 }
  0x31   :  { %192 = vmatmul.bf16.gmra.mxu0 %v108_v23  ;;  %202 = vmatmul.bf16.gmra.mxu1 %v110_v24 }
  0x32   :  { %212 = vmatmul.bf16.gmra.mxu2 %v112_v25  ;;  %222 = vmatmul.bf16.gmra.mxu3 %v114_v26 }
  0x9e   :  { %v188_v27 = vpop.f32.mrf.mxu0  ;;  %v198_v28 = vpop.f32.mrf.mxu1 }
  0x9f   :  { %v282_v41 = vmul.f32 %v188_v27, %v188_v27  ;;  %v286_v55 = vmul.f32 %v198_v28, %v198_v28 }
  0xa5   :  { %v208_v29 = vpop.f32.mrf.mxu2  ;;  %v600_v20 = vpop.f32.mrf.mxu3 }
  0xa6   :  { %v190_v30 = vpop.f32.mrf.mxu0  ;;  %v200_v31 = vpop.f32.mrf.mxu1  ;;  %v290_v7 = vmul.f32 %v208_v29, %v208_v29  ;;  %v294_v19 = vmul.f32 %v600_v20, %v600_v20 }
  0xa7   :  { %v403_v32 = vpack.c.bf16 %v190_v30, %v188_v27  ;;  %v413_v33 = vpack.c.bf16 %v200_v31, %v198_v28  ;;  %v283_v40 = vmul.f32 %v190_v30, %v190_v30  ;;  %v260_v43 = vadd.f32 %v190_v30, %v188_v27 }
  0xa8   :  { %v287_v58 = vmul.f32 %v200_v31, %v200_v31 }
  0xa9   :  { %404 = vst [vmem:[%s640_s4] sm:$0xff] %v403_v32   ;;  %v298_v44 = vadd.f32 %v283_v40, %v282_v41 }
  0xaa   :  { %448 = vst [vmem:[%s640_s4 + $0x10] sm:$0xff] %v413_v33  }
  0xad   :  { %v210_v34 = vpop.f32.mrf.mxu2  ;;  %v220_v35 = vpop.f32.mrf.mxu3 }
  0xae   :  { %v193_v36 = vpop.f32.mrf.mxu0  ;;  %v203_v37 = vpop.f32.mrf.mxu1  ;;  %v423_v38 = vpack.c.bf16 %v210_v34, %v208_v29  ;;  %v433_v39 = vpack.c.bf16 %v220_v35, %v600_v20  ;;  %v291_v11 = vmul.f32 %v210_v34, %v210_v34  ;;  %v295_v23 = vmul.f32 %v220_v35, %v220_v35 }
  0xaf   :  { %v284_v42 = vmul.f32 %v193_v36, %v193_v36  ;;  %v261_v45 = vadd.f32 %v260_v43, %v193_v36  ;;  %v288_v61 = vmul.f32 %v203_v37, %v203_v37 }
  0xb0   :  { %450 = vst [vmem:[%s640_s4 + $0x20] sm:$0xff] %v423_v38  }
  0xb1   :  { %452 = vst [vmem:[%s640_s4 + $0x30] sm:$0xff] %v433_v39   ;;  %v299_v48 = vadd.f32 %v298_v44, %v284_v42 }
  0xb5   :  { %v213_v46 = vpop.f32.mrf.mxu2  ;;  %v223_v47 = vpop.f32.mrf.mxu3 }
  0xb6   :  { %v195_v49 = vpop.f32.mrf.mxu0  ;;  %v205_v50 = vpop.f32.mrf.mxu1  ;;  %v292_v15 = vmul.f32 %v213_v46, %v213_v46  ;;  %v296_v27 = vmul.f32 %v223_v47, %v223_v47 }
  0xb7   :  { %v408_v51 = vpack.c.bf16 %v195_v49, %v193_v36  ;;  %v262_v52 = vadd.f32 %v261_v45, %v195_v49  ;;  %v285_v53 = vmul.f32 %v195_v49, %v195_v49  ;;  %v418_v54 = vpack.c.bf16 %v205_v50, %v203_v37 }
  0xb8   :  { %v289_v5 = vmul.f32 %v205_v50, %v205_v50 }
  0xb9   :  { %447 = vst [vmem:[%s640_s4 + $0x8] sm:$0xff] %v408_v51   ;;  %v263_v56 = vadd.f32 %v262_v52, %v198_v28  ;;  %v300_v57 = vadd.f32 %v299_v48, %v285_v53 }
  0xba   :  { %449 = vst [vmem:[%s640_s4 + $0x18] sm:$0xff] %v418_v54  }
  0xbb   :  { %v301_v59 = vadd.f32 %v300_v57, %v286_v55  ;;  %v264_v60 = vadd.f32 %v263_v56, %v200_v31 }
  0xbd   :  { %v265_v62 = vadd.f32 %v264_v60, %v203_v37  ;;  %v302_v63 = vadd.f32 %v301_v59, %v287_v58  ;;  %v215_v0 = vpop.f32.mrf.mxu2  ;;  %v225_v1 = vpop.f32.mrf.mxu3 }
  0xbe   :  { %v428_v2 = vpack.c.bf16 %v215_v0, %v213_v46  ;;  %v438_v3 = vpack.c.bf16 %v225_v1, %v223_v47  ;;  %v293_v18 = vmul.f32 %v215_v0, %v215_v0  ;;  %v297_v31 = vmul.f32 %v225_v1, %v225_v1 }
  0xbf   :  { %v266_v4 = vadd.f32 %v265_v62, %v205_v50  ;;  %v303_v6 = vadd.f32 %v302_v63, %v288_v61 }
  0xc0   :  { %451 = vst [vmem:[%s640_s4 + $0x28] sm:$0xff] %v428_v2  }
  0xc1   :  { %v267_v8 = vadd.f32 %v266_v4, %v208_v29  ;;  %v304_v9 = vadd.f32 %v303_v6, %v289_v5  ;;  %453 = vst [vmem:[%s640_s4 + $0x38] sm:$0xff] %v438_v3  }
  0xc3   :  { %v305_v12 = vadd.f32 %v304_v9, %v290_v7  ;;  %v268_v13 = vadd.f32 %v267_v8, %v210_v34 }
  0xc5   :  { %v269_v14 = vadd.f32 %v268_v13, %v213_v46  ;;  %v306_v16 = vadd.f32 %v305_v12, %v291_v11 }
  0xc7   :  { %v307_v17 = vadd.f32 %v306_v16, %v292_v15  ;;  %v270_v10 = vadd.f32 %v269_v14, %v215_v0 }
  0xc9   :  { %v271_v21 = vadd.f32 %v270_v10, %v600_v20  ;;  %v308_v22 = vadd.f32 %v307_v17, %v293_v18 }
  0xcb   :  { %v309_v24 = vadd.f32 %v308_v22, %v294_v19  ;;  %v272_v25 = vadd.f32 %v271_v21, %v220_v35 }
  0xcd   :  { %v273_v26 = vadd.f32 %v272_v25, %v223_v47  ;;  %v310_v28 = vadd.f32 %v309_v24, %v295_v23 }
  0xcf   :  { %v311_v29 = vadd.f32 %v310_v28, %v296_v27  ;;  %v274_v30 = vadd.f32 %v273_v26, %v225_v1 }
  0xd1   :  { %v275_v32 = vrot.slane %v274_v30, 4  ;;  %v312_v33 = vadd.f32 %v311_v29, %v297_v31 }
  0xd3   :  { %v276_v34 = vadd.f32 %v275_v32, %v274_v30  ;;  %v313_v36 = vrot.slane %v312_v33, 4 }
  0xd5   :  { %v277_v37 = vrot.slane %v276_v34, 2  ;;  %v314_v38 = vadd.f32 %v313_v36, %v312_v33 }
  0xd7   :  { %v278_v39 = vadd.f32 %v277_v37, %v276_v34  ;;  %v315_v40 = vrot.slane %v314_v38, 2 }
  0xd9   :  { %v279_v41 = vrot.slane %v278_v39, 1  ;;  %v316_v20 = vadd.f32 %v315_v40, %v314_v38 }
  0xdb   :  { %v280_v42 = vadd.f32 %v279_v41, %v278_v39  ;;  %v317_v43 = vrot.slane %v316_v20, 1 }
  0xdd   :  { %281 = vst [vmem:[%s641_s5] sm:$0x1] %v280_v42  ;;  %v318_v35 = vadd.f32 %v317_v43, %v316_v20 }
  0xdf   :  { %319 = vst [vmem:[%s641_s5 + $0x1] sm:$0x1] %v318_v35 }

// kernel: bottleneck_forward.5
= control target key start
LH: loop header
LB: loop body
LE: loop exit
PB: predicated region body
PF: predicated region fallthrough
CT: control target
= control target key end

     0   :  { %s2071_s18 = smov 0   ;;  %s2522_s0 = inlined_call_operand.vmem [shape: bf16[2,8,8,128], index: 0, kind: input, shape index: {}]   ;;  %s2523_s1 = inlined_call_operand.vmem [shape: f32[1,128], index: 1, kind: input, shape index: {}]   ;;  %s2524_s2 = inlined_call_operand.vmem [shape: f32[1,128], index: 2, kind: input, shape index: {}]   ;;  %s2525_s3 = inlined_call_operand.vmem [shape: bf16[9,128,128], index: 3, kind: input, shape index: {}]   ;;  %s2526_s4 = inlined_call_operand.vmem [shape: bf16[2,8,8,128], index: 4, kind: output, shape index: {0}]   ;;  %s2527_s5 = inlined_call_operand.vmem [shape: f32[2,2,128], index: 5, kind: output, shape index: {1}]  }
   0x1 LB: > { %s1461_s19 = sadd.s32 4294967295, %s2038_s18   ;;  %p1465_p0 = scmp.ge.s32.totalorder %s2038_s18, 1  ;;  %s2038_s18 = sphi %s2071_s18, %s16_s18  }
   0x2   : > { %p190_p1 = scmp.lt.s32.totalorder %s2038_s18, 3 }
   0x4   : > { %p191_p2 = pnand %p1465_p0, %p190_p1 }
   0x5   : > { %p222_p3 = scmp.lt.s32.totalorder (!%p191_p2), %s1461_s19, 1 }
   0x6   : > { %194 = sbr.rel (%p191_p2) target bundleno = 346 (0x15a), region = 36 }
   0xb   : > { %v1906_v0 = vld [vmem:[%s2525_s3 + $0x78] sm:$0xff]  ;;  %v2040_v2 = vmov 0.0   ;;  %v1905_v3 = vld [vmem:[%s2525_s3 + $0x70] sm:$0xff]  ;;  %s2529_s19 = smov (!%p222_p3, %s1461_s19), 1  ;;  %v1904_v6 = vld [vmem:[%s2525_s3 + $0x68] sm:$0xff] }
   0xc   : > { %v1914_v1 = vld [vmem:[%s2525_s3 + $0xb8] sm:$0xff]  ;;  %292 = vst [vmem:[#allocation2 + $0x40] sm:$0xff] %v2040_v2  ;;  %2005 = vmatpush.bf16.msra.mxu1 %v1906_v0  ;;  %418 = vmatpush.bf16.msra.mxu0 %v1906_v0  ;;  %v1913_v4 = vld [vmem:[%s2525_s3 + $0xb0] sm:$0xff]  ;;  %s1889_s30 = sshll.u32 %s2529_s19, 5  ;;  %v1912_v10 = vld [vmem:[%s2525_s3 + $0xa8] sm:$0xff] }
   0xd   : > { %293 = vst [vmem:[#allocation2 + $0x48] sm:$0x3] %v2040_v2  ;;  %601 = vmatpush.bf16.msra.mxu2 %v1914_v1  ;;  %v1922_v5 = vld [vmem:[%s2525_s3 + $0xf8] sm:$0xff]  ;;  %v1921_v7 = vld [vmem:[%s2525_s3 + $0xf0] sm:$0xff]  ;;  %s2112_s12 = scalar_lea.vmem %s2522_s0, %s1889_s30  ;;  %v2124_v13 = vld [vmem:[%s2523_s1] ss:$0 sm:$0xff]  ;;  %s2498_s17 = scalar_lea.vmem %s2526_s4, %s1889_s30 }
   0xe   : > { %294 = vst [vmem:[#allocation2 + $0x50] sm:$0xff] %v2040_v2  ;;  %715 = vmatpush.bf16.msra.mxu3 %v1922_v5  ;;  %v1999_v8 = vld [vmem:[%s2112_s12 + $0x8] sm:$0xff]   ;;  %v2000_v9 = vld [vmem:[%s2112_s12 + $0x10] sm:$0xff]   ;;  %v2129_v14 = vld [vmem:[%s2524_s2] ss:$0 sm:$0xff]  ;;  %s1470_s30 = sshll.u32 %s2529_s19, 1 }
   0xf   : > { %295 = vst [vmem:[#allocation2 + $0x58] sm:$0x3] %v2040_v2  ;;  %v1970_v11 = vunpack.c.h.bf16 %v1999_v8  ;;  %v1973_v12 = vunpack.c.l.bf16 %v2000_v9  ;;  %v1920_v15 = vld [vmem:[%s2525_s3 + $0xe8] sm:$0xff]  ;;  %v1964_v18 = vld [vmem:[%s2112_s12] sm:$0xff]   ;;  %v1974_v21 = vunpack.c.h.bf16 %v2000_v9  ;;  %v1969_v26 = vunpack.c.l.bf16 %v1999_v8  ;;  %v2153_v28 = vld [vmem:[%s2112_s12 + $0x18] sm:$0xff]   ;;  %s235_s22 = scalar_lea.vmem %s2527_s5, %s1470_s30 }
  0x10   : > { %284 = vst [vmem:[#allocation2] sm:$0xff] %v2040_v2  ;;  %2006 = vmatpush.bf16.msra.mxu1 %v1905_v3  ;;  %419 = vmatpush.bf16.msra.mxu0 %v1905_v3  ;;  %v1903_v19 = vld [vmem:[%s2525_s3 + $0x60] sm:$0xff]  ;;  %v1965_v20 = vunpack.c.l.bf16 %v1964_v18  ;;  %v1966_v22 = vunpack.c.h.bf16 %v1964_v18  ;;  %v1977_v31 = vunpack.c.l.bf16 %v2153_v28  ;;  %v1902_v32 = vld [vmem:[%s2525_s3 + $0x58] sm:$0xff]  ;;  %v1901_v41 = vld [vmem:[%s2525_s3 + $0x50] sm:$0xff] }
  0x11   : > { %285 = vst [vmem:[#allocation2 + $0x8] sm:$0x3] %v2040_v2  ;;  %602 = vmatpush.bf16.msra.mxu2 %v1913_v4  ;;  %v260_v16 = vmul.f32 %v2124_v13, %v1970_v11  ;;  %v261_v17 = vmul.f32 %v2124_v13, %v1973_v12  ;;  %v1911_v23 = vld [vmem:[%s2525_s3 + $0xa0] sm:$0xff]  ;;  %v262_v34 = vmul.f32 %v2124_v13, %v1974_v21  ;;  %v1910_v36 = vld [vmem:[%s2525_s3 + $0x98] sm:$0xff]  ;;  %v1909_v44 = vld [vmem:[%s2525_s3 + $0x90] sm:$0xff] }
  0x12   : > { %286 = vst [vmem:[#allocation2 + $0x10] sm:$0xff] %v2040_v2  ;;  %716 = vmatpush.bf16.msra.mxu3 %v1921_v7  ;;  %v257_v27 = vmul.f32 %v2124_v13, %v1965_v20  ;;  %v1919_v30 = vld [vmem:[%s2525_s3 + $0xe0] sm:$0xff]  ;;  %v258_v35 = vmul.f32 %v2124_v13, %v1966_v22  ;;  %v263_v38 = vmul.f32 %v2124_v13, %v1977_v31  ;;  %v1918_v40 = vld [vmem:[%s2525_s3 + $0xd8] sm:$0xff]  ;;  %v1917_v48 = vld [vmem:[%s2525_s3 + $0xd0] sm:$0xff] }
  0x13   : > { %287 = vst [vmem:[#allocation2 + $0x18] sm:$0x3] %v2040_v2  ;;  %v271_v24 = vadd.f32 %v2129_v14, %v260_v16  ;;  %v272_v25 = vadd.f32 %v2129_v14, %v261_v17  ;;  %v259_v39 = vmul.f32 %v2124_v13, %v1969_v26  ;;  %v273_v42 = vadd.f32 %v2129_v14, %v262_v34  ;;  %v1900_v49 = vld [vmem:[%s2525_s3 + $0x48] sm:$0xff]  ;;  %v1899_v56 = vld [vmem:[%s2525_s3 + $0x40] sm:$0xff]  ;;  %v1898_v58 = vld [vmem:[%s2525_s3 + $0x38] sm:$0xff] }
  0x14   : > { %288 = vst [vmem:[#allocation2 + $0x20] sm:$0xff] %v2040_v2  ;;  %2007 = vmatpush.bf16.msra.mxu1 %v1904_v6  ;;  %420 = vmatpush.bf16.msra.mxu0 %v1904_v6  ;;  %v268_v37 = vadd.f32 %v2129_v14, %v257_v27  ;;  %v269_v43 = vadd.f32 %v2129_v14, %v258_v35  ;;  %v1908_v52 = vld [vmem:[%s2525_s3 + $0x88] sm:$0xff]  ;;  %v1907_v59 = vld [vmem:[%s2525_s3 + $0x80] sm:$0xff]  ;;  %v1930_v60 = vld [vmem:[%s2525_s3 + $0x138] sm:$0xff] }
  0x15   : > { %289 = vst [vmem:[#allocation2 + $0x28] sm:$0x3] %v2040_v2  ;;  %603 = vmatpush.bf16.msra.mxu2 %v1912_v10  ;;  %v2155_v29 = vmax.f32 %v271_v24, 0.0  ;;  %v2165_v33 = vmax.f32 %v272_v25, 0.0  ;;  %v274_v46 = vadd.f32 %v2129_v14, %v263_v38  ;;  %v270_v47 = vadd.f32 %v2129_v14, %v259_v39  ;;  %v1916_v55 = vld [vmem:[%s2525_s3 + $0xc8] sm:$0xff]  ;;  %v1946_v62 = vld [vmem:[%s2525_s3 + $0x1b8] sm:$0xff] }
  0x16   : > { %290 = vst [vmem:[#allocation2 + $0x30] sm:$0xff] %v2040_v2  ;;  %717 = vmatpush.bf16.msra.mxu3 %v1920_v15  ;;  %v2192_v45 = vmax.f32 %v268_v37, 0.0  ;;  %v2205_v50 = vmax.f32 %v273_v42, 0.0  ;;  %v2207_v51 = vmax.f32 %v269_v43, 0.0  ;;  %v1915_v3 = vld [vmem:[%s2525_s3 + $0xc0] sm:$0xff]  ;;  %v1897_v4 = vld [vmem:[%s2525_s3 + $0x30] sm:$0xff]  ;;  %v1978_v43 = vunpack.c.h.bf16 %v2153_v28 }
  0x17   : > { %291 = vst [vmem:[#allocation2 + $0x38] sm:$0x3] %v2040_v2  ;;  %v2213_v53 = vmax.f32 %v274_v46, 0.0  ;;  %v2215_v54 = vmax.f32 %v270_v47, 0.0  ;;  %v2241_v63 = vpack.c.bf16 %v2165_v33, %v2155_v29  ;;  %v1954_v7 = vld [vmem:[%s2525_s3 + $0x1f8] sm:$0xff]  ;;  %v1929_v8 = vld [vmem:[%s2525_s3 + $0x130] sm:$0xff] }
  0x18   : > { %296 = vst [vmem:[#allocation2 + $0x60] sm:$0xff] %v2040_v2  ;;  %2008 = vmatpush.bf16.msra.mxu1 %v1903_v19  ;;  %421 = vmatpush.bf16.msra.mxu0 %v1903_v19  ;;  %v341_v57 = vld [vmem:[#allocation2 + $0x1] sm:$0xff]  ;;  %v1945_v9 = vld [vmem:[%s2525_s3 + $0x1b0] sm:$0xff]  ;;  %v1894_v22 = vld [vmem:[%s2525_s3 + $0x18] sm:$0xff]  ;;  %v264_v46 = vmul.f32 %v2124_v13, %v1978_v43 }
  0x19   : > { %297 = vst [vmem:[#allocation2 + $0x68] sm:$0x3] %v2040_v2  ;;  %604 = vmatpush.bf16.msra.mxu2 %v1911_v23  ;;  %v524_v61 = vld [vmem:[#allocation2 + $0x2] sm:$0xff]  ;;  %v349_v0 = vpack.c.bf16 %v2192_v45, %v341_v57  ;;  %v1953_v15 = vld [vmem:[%s2525_s3 + $0x1f0] sm:$0xff]  ;;  %v1926_v25 = vld [vmem:[%s2525_s3 + $0x118] sm:$0xff]  ;;  %v2305_v26 = vpack.c.bf16 %v2213_v53, %v2205_v50  ;;  %v2309_v27 = vpack.c.bf16 %v2215_v54, %v2207_v51 }
  0x1a   : > { %308 = vst [vmem:[#allocation2 + $0x41] sm:$0xff] %v2155_v29  ;;  %718 = vmatpush.bf16.msra.mxu3 %v1919_v30  ;;  %v1896_v12 = vld [vmem:[%s2525_s3 + $0x28] sm:$0xff]  ;;  %v1895_v18 = vld [vmem:[%s2525_s3 + $0x20] sm:$0xff]  ;;  %v1893_v34 = vld [vmem:[%s2525_s3 + $0x10] sm:$0xff] }
  0x1b   : > { %309 = vst [vmem:[#allocation2 + $0x51] sm:$0xff] %v2165_v33  ;;  %v1928_v16 = vld [vmem:[%s2525_s3 + $0x128] sm:$0xff]  ;;  %v1927_v20 = vld [vmem:[%s2525_s3 + $0x120] sm:$0xff]  ;;  %v1925_v35 = vld [vmem:[%s2525_s3 + $0x110] sm:$0xff] }
  0x1c   : > { %298 = vst [vmem:[#allocation2 + $0x70] sm:$0xff] %v2040_v2  ;;  %2009 = vmatpush.bf16.msra.mxu1 %v1902_v32  ;;  %422 = vmatpush.bf16.msra.mxu0 %v1902_v32  ;;  %v1944_v17 = vld [vmem:[%s2525_s3 + $0x1a8] sm:$0xff]  ;;  %v1943_v21 = vld [vmem:[%s2525_s3 + $0x1a0] sm:$0xff]  ;;  %v1942_v37 = vld [vmem:[%s2525_s3 + $0x198] sm:$0xff] }
  0x1d   : > { %299 = vst [vmem:[#allocation2 + $0x78] sm:$0x3] %v2040_v2  ;;  %605 = vmatpush.bf16.msra.mxu2 %v1910_v36  ;;  %v1952_v19 = vld [vmem:[%s2525_s3 + $0x1e8] sm:$0xff]  ;;  %v1951_v38 = vld [vmem:[%s2525_s3 + $0x1e0] sm:$0xff]  ;;  %v1950_v42 = vld [vmem:[%s2525_s3 + $0x1d8] sm:$0xff] }
  0x1e   : > { %300 = vst [vmem:[#allocation2 + $0x80] sm:$0xff] %v2040_v2  ;;  %719 = vmatpush.bf16.msra.mxu3 %v1918_v40  ;;  %v1892_v39 = vld [vmem:[%s2525_s3 + $0x8] sm:$0xff]  ;;  %v1938_v47 = vld [vmem:[%s2525_s3 + $0x178] sm:$0xff] }
  0x1f   : > { %301 = vst [vmem:[#allocation2 + $0x88] sm:$0x3] %v2040_v2  ;;  %v1924_v40 = vld [vmem:[%s2525_s3 + $0x108] sm:$0xff]  ;;  %v1962_v28 = vld [vmem:[%s2525_s3 + $0x238] sm:$0xff] }
  0x20   : > { %302 = vst [vmem:[#allocation2 + $0x90] sm:$0xff] %v2040_v2  ;;  %2010 = vmatpush.bf16.msra.mxu1 %v1901_v41  ;;  %423 = vmatpush.bf16.msra.mxu0 %v1901_v41  ;;  %v1941_v41 = vld [vmem:[%s2525_s3 + $0x190] sm:$0xff] }
  0x21   : > { %303 = vst [vmem:[#allocation2 + $0x98] sm:$0x3] %v2040_v2  ;;  %606 = vmatpush.bf16.msra.mxu2 %v1909_v44  ;;  %v2317_v32 = vld [vmem:[#allocation2 + $0x40] sm:$0xff] }
  0x22   : > { %305 = vst [vmem:[#allocation2 + $0x11] sm:$0xff] %v2192_v45  ;;  %720 = vmatpush.bf16.msra.mxu3 %v1917_v48  ;;  %v1891_v44 = vld [vmem:[%s2525_s3] sm:$0xff]  ;;  %v2365_v13 = vld [vmem:[#allocation2 + $0x52] sm:$0xff] }
  0x23   : > { %310 = vst [vmem:[#allocation2 + $0x61] sm:$0xff] %v2205_v50  ;;  %v1923_v48 = vld [vmem:[%s2525_s3 + $0x100] sm:$0xff] }
  0x24   : > { %311 = vst [vmem:[#allocation2 + $0x71] sm:$0xff] %v2213_v53  ;;  %2011 = vmatpush.bf16.msra.mxu1 %v1900_v49  ;;  %424 = vmatpush.bf16.msra.mxu0 %v1900_v49  ;;  %v275_v49 = vadd.f32 %v2129_v14, %v264_v46 }
  0x25   : > { %306 = vst [vmem:[#allocation2 + $0x21] sm:$0xff] %v2207_v51  ;;  %607 = vmatpush.bf16.msra.mxu2 %v1908_v52  ;;  %v2363_v52 = vld [vmem:[#allocation2 + $0x42] sm:$0xff] }
  0x26   : > { %307 = vst [vmem:[#allocation2 + $0x31] sm:$0xff] %v2215_v54  ;;  %721 = vmatpush.bf16.msra.mxu3 %v1916_v55  ;;  %v2367_v55 = vmax.f32 %v275_v49, 0.0  ;;  %v2379_v14 = vpack.c.bf16 %v2365_v13, %v2363_v52 }
  0x28   : > { %2012 = vmatpush.bf16.msra.mxu1 %v1899_v56  ;;  %425 = vmatpush.bf16.msra.mxu0 %v1899_v56  ;;  %v1937_v56 = vld [vmem:[%s2525_s3 + $0x170] sm:$0xff]  ;;  %312 = vst [vmem:[#allocation2 + $0x81] sm:$0xff] %v2367_v55 }
  0x29   : > { %v2244_v1 = vld [vmem:[#allocation2 + $0x12] sm:$0xff]  ;;  %608 = vmatpush.bf16.msra.mxu2 %v1907_v59 }
  0x2a   : > { %v532_v5 = vpack.c.bf16 %v2244_v1, %v524_v61  ;;  %v2253_v6 = vld [vmem:[#allocation2 + $0x10] sm:$0xff]  ;;  %722 = vmatpush.bf16.msra.mxu3 %v1915_v3 }
  0x2b   : > { %436 = vmatmul.bf16.vlgmr.msra.gmra.mxu1 %v2241_v63  ;;  %426 = vmatmul.bf16.vlgmr.msra.gmra.mxu0 %v349_v0  ;;  %v321_v57 = vpack.c.bf16 %v2253_v6, %v2040_v2  ;;  %v642_v59 = vld [vmem:[#allocation2 + $0x50] sm:$0xff]  ;;  %v1936_v2 = vld [vmem:[%s2525_s3 + $0x168] sm:$0xff] }
  0x2c   : > { %495 = vmatpush.bf16.msrb.mxu1 %v1898_v58  ;;  %829 = vmatpush.bf16.msrb.mxu0 %v1930_v60  ;;  %v2265_v10 = vld [vmem:[#allocation2 + $0x20] sm:$0xff]  ;;  %v760_v58 = vpack.c.bf16 %v2207_v51, %v2192_v45  ;;  %v1961_v61 = vld [vmem:[%s2525_s3 + $0x230] sm:$0xff]  ;;  %v1940_v45 = vld [vmem:[%s2525_s3 + $0x188] sm:$0xff] }
  0x2d   : > { %1058 = vmatpush.bf16.msrb.mxu2 %v1946_v62  ;;  %v646_v11 = vpack.c.bf16 %v2265_v10, %v2253_v6  ;;  %v2296_v23 = vld [vmem:[#allocation2 + $0x22] sm:$0xff]  ;;  %v2298_v24 = vld [vmem:[#allocation2 + $0x32] sm:$0xff]  ;;  %v762_v62 = vpack.c.bf16 %v2205_v50, %v2165_v33 }
  0x2e   : > { %609 = vmatmul.bf16.vlgmr.msra.gmra.mxu2 %v532_v5  ;;  %1172 = vmatpush.bf16.msrb.mxu3 %v1954_v7  ;;  %v2313_v30 = vpack.c.bf16 %v2298_v24, %v2296_v23  ;;  %v2315_v31 = vld [vmem:[#allocation2 + $0x30] sm:$0xff]  ;;  %v2381_v60 = vld [vmem:[#allocation2 + $0x60] sm:$0xff]  ;;  %v1960_v0 = vld [vmem:[%s2525_s3 + $0x228] sm:$0xff] }
  0x2f   : > { %723 = vmatmul.bf16.vlgmr.msra.gmra.mxu3 %v646_v11  ;;  %v647_v36 = vpack.c.bf16 %v2317_v32, %v2315_v31  ;;  %v648_v51 = vpack.c.bf16 %v2381_v60, %v642_v59  ;;  %v1949_v3 = vld [vmem:[%s2525_s3 + $0x1d0] sm:$0xff]  ;;  %v1935_v33 = vld [vmem:[%s2525_s3 + $0x160] sm:$0xff]  ;;  %v1948_v50 = vld [vmem:[%s2525_s3 + $0x1c8] sm:$0xff]  ;;  %v322_v11 = vpack.c.bf16 %v2315_v31, %v2265_v10 }
  0x30   : > { %496 = vmatpush.bf16.msrb.mxu1 %v1897_v4  ;;  %830 = vmatpush.bf16.msrb.mxu0 %v1929_v8  ;;  %v1939_v4 = vld [vmem:[%s2525_s3 + $0x180] sm:$0xff]  ;;  %v1934_v6 = vld [vmem:[%s2525_s3 + $0x158] sm:$0xff] }
  0x31   : > { %1059 = vmatpush.bf16.msrb.mxu2 %v1945_v9  ;;  %v1959_v5 = vld [vmem:[%s2525_s3 + $0x220] sm:$0xff]  ;;  %v2419_v8 = vld [vmem:[#allocation2 + $0x72] sm:$0xff] }
  0x32   : > { %1173 = vmatpush.bf16.msrb.mxu3 %v1953_v15  ;;  %v2417_v7 = vld [vmem:[#allocation2 + $0x62] sm:$0xff]  ;;  %v1933_v9 = vld [vmem:[%s2525_s3 + $0x150] sm:$0xff]  ;;  %v1958_v10 = vld [vmem:[%s2525_s3 + $0x218] sm:$0xff] }
  0x33   : > { %v535_v15 = vpack.c.bf16 %v2419_v8, %v2417_v7 }
  0x34   : > { %497 = vmatpush.bf16.msrb.mxu1 %v1896_v12  ;;  %831 = vmatpush.bf16.msrb.mxu0 %v1928_v16  ;;  %v761_v12 = vpack.c.bf16 %v2155_v29, %v2215_v54  ;;  %v644_v16 = vld [vmem:[#allocation2 + $0x70] sm:$0xff]  ;;  %v1947_v29 = vld [vmem:[%s2525_s3 + $0x1c0] sm:$0xff]  ;;  %v874_v54 = vpack.c.bf16 %v2296_v23, %v2244_v1  ;;  %v323_v1 = vpack.c.bf16 %v642_v59, %v2317_v32 }
  0x35   : > { %1060 = vmatpush.bf16.msrb.mxu2 %v1944_v17  ;;  %v645_v17 = vld [vmem:[#allocation2 + $0x80] sm:$0xff]  ;;  %v324_v31 = vpack.c.bf16 %v644_v16, %v2381_v60  ;;  %v763_v32 = vpack.c.bf16 %v2367_v55, %v2213_v53 }
  0x36   : > { %1174 = vmatpush.bf16.msrb.mxu3 %v1952_v19  ;;  %v1932_v19 = vld [vmem:[%s2525_s3 + $0x148] sm:$0xff]  ;;  %v1955_v23 = vld [vmem:[%s2525_s3 + $0x200] sm:$0xff] }
  0x37   : > { %v1215_v53 = vld [vmem:[#allocation2 + $0x82] sm:$0xff] }
  0x38   : > { %498 = vmatpush.bf16.msrb.mxu1 %v1895_v18  ;;  %832 = vmatpush.bf16.msrb.mxu0 %v1927_v20  ;;  %v649_v18 = vpack.c.bf16 %v645_v17, %v644_v16  ;;  %v1957_v20 = vld [vmem:[%s2525_s3 + $0x210] sm:$0xff] }
  0x39   : > { %1061 = vmatpush.bf16.msrb.mxu2 %v1943_v21  ;;  %v1931_v21 = vld [vmem:[%s2525_s3 + $0x140] sm:$0xff] }
  0x3a   : > { %1175 = vmatpush.bf16.msrb.mxu3 %v1951_v38 }
  0x3b   : > { %441 = vmatmul.bf16.gmra.mxu1 %v2305_v26  ;;  %431 = vmatmul.bf16.gmra.mxu0 %v2309_v27 }
  0x3c   : > { %499 = vmatpush.bf16.msrb.mxu1 %v1894_v22  ;;  %833 = vmatpush.bf16.msrb.mxu0 %v1926_v25  ;;  %v1956_v22 = vld [vmem:[%s2525_s3 + $0x208] sm:$0xff]  ;;  %v875_v25 = vpack.c.bf16 %v2363_v52, %v2298_v24  ;;  %v992_v24 = vpack.c.bf16 0.0, %v645_v17 }
  0x3d   : > { %1062 = vmatpush.bf16.msrb.mxu2 %v1942_v37 }
  0x3e   : > { %614 = vmatmul.bf16.gmra.mxu2 %v2313_v30  ;;  %1176 = vmatpush.bf16.msrb.mxu3 %v1950_v42 }
  0x3f   : > { %728 = vmatmul.bf16.gmra.mxu3 %v647_v36 }
  0x40   : > { %500 = vmatpush.bf16.msrb.mxu1 %v1893_v34  ;;  %834 = vmatpush.bf16.msrb.mxu0 %v1925_v35  ;;  %v1102_v34 = vld [vmem:[#allocation2 + $0x91] sm:$0xff] }
  0x41   : > { %1063 = vmatpush.bf16.msrb.mxu2 %v1941_v41  ;;  %v1216_v35 = vld [vmem:[#allocation2 + $0x92] sm:$0xff]  ;;  %v877_v41 = vpack.c.bf16 %v1215_v53, %v2419_v8 }
  0x42   : > { %1177 = vmatpush.bf16.msrb.mxu3 %v1949_v3 }
  0x44   : > { %501 = vmatpush.bf16.msrb.mxu1 %v1892_v39  ;;  %835 = vmatpush.bf16.msrb.mxu0 %v1924_v40 }
  0x45   : > { %1064 = vmatpush.bf16.msrb.mxu2 %v1940_v45 }
  0x46   : > { %1178 = vmatpush.bf16.msrb.mxu3 %v1948_v50 }
  0x48   : > { %502 = vmatpush.bf16.msrb.mxu1 %v1891_v44  ;;  %836 = vmatpush.bf16.msrb.mxu0 %v1923_v48 }
  0x49   : > { %1065 = vmatpush.bf16.msrb.mxu2 %v1939_v4 }
  0x4a   : > { %1179 = vmatpush.bf16.msrb.mxu3 %v1947_v29 }
  0x4b   : > { %503 = vmatmul.bf16.vlgmr.msrb.gmra.mxu1 %v321_v57  ;;  %837 = vmatmul.bf16.vlgmr.msrb.gmra.mxu0 %v760_v58 }
  0x4c   : > { %943 = vmatpush.bf16.msra.mxu1 %v1938_v47  ;;  %1286 = vmatpush.bf16.msra.mxu0 %v1962_v28 }
  0x4d   : > { %2013 = vmatpush.bf16.msra.mxu2 %v1962_v28 }
  0x4e   : > { %619 = vmatmul.bf16.gmra.mxu2 %v2379_v14 }
  0x4f   : > { %733 = vmatmul.bf16.gmra.mxu3 %v648_v51 }
  0x50   : > { %944 = vmatpush.bf16.msra.mxu1 %v1937_v56  ;;  %1287 = vmatpush.bf16.msra.mxu0 %v1961_v61 }
  0x51   : > { %2014 = vmatpush.bf16.msra.mxu2 %v1961_v61 }
  0x54   : > { %945 = vmatpush.bf16.msra.mxu1 %v1936_v2  ;;  %1288 = vmatpush.bf16.msra.mxu0 %v1960_v0 }
  0x55   : > { %2015 = vmatpush.bf16.msra.mxu2 %v1960_v0 }
  0x58   : > { %946 = vmatpush.bf16.msra.mxu1 %v1935_v33  ;;  %1289 = vmatpush.bf16.msra.mxu0 %v1959_v5 }
  0x59   : > { %2016 = vmatpush.bf16.msra.mxu2 %v1959_v5 }
  0x5b   : > { %508 = vmatmul.bf16.gmra.mxu1 %v322_v11  ;;  %842 = vmatmul.bf16.gmra.mxu0 %v761_v12 }
  0x5c   : > { %947 = vmatpush.bf16.msra.mxu1 %v1934_v6  ;;  %1290 = vmatpush.bf16.msra.mxu0 %v1958_v10 }
  0x5d   : > { %2017 = vmatpush.bf16.msra.mxu2 %v1958_v10 }
  0x5e   : > { %624 = vmatmul.bf16.gmra.mxu2 %v535_v15 }
  0x5f   : > { %738 = vmatmul.bf16.gmra.mxu3 %v649_v18 }
  0x60   : > { %948 = vmatpush.bf16.msra.mxu1 %v1933_v9  ;;  %1291 = vmatpush.bf16.msra.mxu0 %v1957_v20 }
  0x61   : > { %2018 = vmatpush.bf16.msra.mxu2 %v1957_v20 }
  0x64   : > { %949 = vmatpush.bf16.msra.mxu1 %v1932_v19  ;;  %1292 = vmatpush.bf16.msra.mxu0 %v1956_v22 }
  0x65   : > { %2019 = vmatpush.bf16.msra.mxu2 %v1956_v22 }
  0x68   : > { %950 = vmatpush.bf16.msra.mxu1 %v1931_v21  ;;  %1293 = vmatpush.bf16.msra.mxu0 %v1955_v23 }
  0x69   : > { %2020 = vmatpush.bf16.msra.mxu2 %v1955_v23 }
  0x6b   : > { %513 = vmatmul.bf16.gmra.mxu1 %v323_v1  ;;  %847 = vmatmul.bf16.gmra.mxu0 %v762_v62 }
  0x6e   : > { %1066 = vmatmul.bf16.vlgmr.msrb.gmra.mxu2 %v322_v11 }
  0x6f   : > { %1180 = vmatmul.bf16.vlgmr.msrb.gmra.mxu3 %v2309_v27  ;;  %v1106_v27 = vpack.c.bf16 %v1102_v34, %v2367_v55 }
  0x7b   : > { %518 = vmatmul.bf16.gmra.mxu1 %v324_v31  ;;  %852 = vmatmul.bf16.gmra.mxu0 %v763_v32 }
  0x7e   : > { %1071 = vmatmul.bf16.gmra.mxu2 %v323_v1 }
  0x7f   : > { %1185 = vmatmul.bf16.gmra.mxu3 %v2241_v63  ;;  %v876_v63 = vpack.c.bf16 %v2417_v7, %v2365_v13 }
  0x8b   : > { %951 = vmatmul.bf16.vlgmr.msra.gmra.mxu1 %v874_v54  ;;  %1294 = vmatmul.bf16.vlgmr.msra.gmra.mxu0 %v2313_v30  ;;  %v1220_v30 = vpack.c.bf16 %v1216_v35, %v1215_v53 }
  0x8e   : > { %1076 = vmatmul.bf16.gmra.mxu2 %v324_v31 }
  0x8f   : > { %1190 = vmatmul.bf16.gmra.mxu3 %v2305_v26 }
  0x9b   : > { %956 = vmatmul.bf16.gmra.mxu1 %v875_v25  ;;  %1299 = vmatmul.bf16.gmra.mxu0 %v2379_v14 }
  0x9e   : > { %1081 = vmatmul.bf16.gmra.mxu2 %v992_v24 }
  0x9f   : > { %1195 = vmatmul.bf16.gmra.mxu3 %v1106_v27 }
  0xa8   : > { %v437_v36 = vpop.f32.mrf.mxu1  ;;  %v427_v37 = vpop.f32.mrf.mxu0 }
  0xab   : > { %961 = vmatmul.bf16.gmra.mxu1 %v876_v63  ;;  %1304 = vmatmul.bf16.gmra.mxu0 %v535_v15 }
  0xae   : > { %1309 = vmatmul.bf16.vlgmr.msra.gmra.mxu2 %v1220_v30 }
  0xb0   : > { %v439_v38 = vpop.f32.mrf.mxu1  ;;  %v429_v39 = vpop.f32.mrf.mxu0 }
  0xb1   : > { %v610_v26 = vpop.f32.mrf.mxu2 }
  0xb2   : > { %v724_v40 = vpop.f32.mrf.mxu3 }
  0xb8   : > { %v442_v43 = vpop.f32.mrf.mxu1  ;;  %v432_v44 = vpop.f32.mrf.mxu0 }
  0xb9   : > { %v612_v42 = vpop.f32.mrf.mxu2 }
  0xba   : > { %v2468_v46 = vpop.f32.mrf.mxu3 }
  0xbb   : > { %966 = vmatmul.bf16.gmra.mxu1 %v877_v41 }
  0xc0   : > { %v444_v48 = vpop.f32.mrf.mxu1  ;;  %v434_v28 = vpop.f32.mrf.mxu0 }
  0xc1   : > { %v615_v47 = vpop.f32.mrf.mxu2 }
  0xc2   : > { %v729_v49 = vpop.f32.mrf.mxu3 }
  0xc8   : > { %v504_v13 = vpop.f32.mrf.mxu1  ;;  %v838_v55 = vpop.f32.mrf.mxu0 }
  0xc9   : > { %v617_v52 = vpop.f32.mrf.mxu2  ;;  %v505_v56 = vadd.f32 %v504_v13, %v427_v37 }
  0xca   : > { %v2470_v58 = vpop.f32.mrf.mxu3 }
  0xcb   : > { %v630_v57 = vadd.f32 %v610_v26, %v505_v56 }
  0xcd   : > { %v744_v14 = vadd.f32 %v724_v40, %v630_v57 }
  0xcf   : > { %v858_v59 = vadd.f32 %v838_v55, %v744_v14 }
  0xd0   : > { %v506_v61 = vpop.f32.mrf.mxu1  ;;  %v840_v2 = vpop.f32.mrf.mxu0 }
  0xd1   : > { %v620_v60 = vpop.f32.mrf.mxu2  ;;  %v507_v45 = vadd.f32 %v506_v61, %v429_v39 }
  0xd2   : > { %v734_v62 = vpop.f32.mrf.mxu3 }
  0xd3   : > { %v631_v51 = vadd.f32 %v612_v42, %v507_v45 }
  0xd8   : > { %v509_v3 = vpop.f32.mrf.mxu1  ;;  %v843_v4 = vpop.f32.mrf.mxu0 }
  0xd9   : > { %v622_v0 = vpop.f32.mrf.mxu2  ;;  %v510_v33 = vadd.f32 %v509_v3, %v432_v44  ;;  %v745_v44 = vadd.f32 %v2468_v46, %v631_v51 }
  0xda   : > { %v2472_v8 = vpop.f32.mrf.mxu3 }
  0xdb   : > { %v632_v50 = vadd.f32 %v615_v47, %v510_v33 }
  0xdd   : > { %v746_v5 = vadd.f32 %v729_v49, %v632_v50 }
  0xdf   : > { %v860_v6 = vadd.f32 %v843_v4, %v746_v5 }
  0xe0   : > { %v511_v9 = vpop.f32.mrf.mxu1  ;;  %v845_v11 = vpop.f32.mrf.mxu0 }
  0xe1   : > { %v625_v7 = vpop.f32.mrf.mxu2  ;;  %v512_v12 = vadd.f32 %v511_v9, %v434_v28 }
  0xe2   : > { %v2474_v10 = vpop.f32.mrf.mxu3 }
  0xe3   : > { %v633_v15 = vadd.f32 %v617_v52, %v512_v12 }
  0xe8   : > { %v514_v17 = vpop.f32.mrf.mxu1  ;;  %v848_v18 = vpop.f32.mrf.mxu0 }
  0xe9   : > { %v627_v16 = vpop.f32.mrf.mxu2  ;;  %v515_v19 = vadd.f32 %v514_v17, %v437_v36 }
  0xea   : > { %v2482_v31 = vpop.f32.mrf.mxu3 }
  0xeb   : > { %v634_v29 = vadd.f32 %v620_v60, %v515_v19 }
  0xed   : > { %v748_v54 = vadd.f32 %v734_v62, %v634_v29 }
  0xef   : > { %v2476_v20 = vadd.f32 %v848_v18, %v748_v54 }
  0xf0   : > { %v516_v22 = vpop.f32.mrf.mxu1  ;;  %v2478_v1 = vpop.f32.mrf.mxu0 }
  0xf1   : > { %v1067_v21 = vpop.f32.mrf.mxu2  ;;  %v517_v23 = vadd.f32 %v516_v22, %v439_v38 }
  0xf2   : > { %v1181_v35 = vpop.f32.mrf.mxu3 }
  0xf3   : > { %v2480_v25 = vadd.f32 %v622_v0, %v517_v23  ;;  %v747_v0 = vadd.f32 %v2470_v58, %v633_v15 }
  0xf8   : > { %v519_v24 = vpop.f32.mrf.mxu1  ;;  %v2484_v34 = vpop.f32.mrf.mxu0 }
  0xf9   : > { %v1069_v32 = vpop.f32.mrf.mxu2  ;;  %v520_v27 = vadd.f32 %v519_v24, %v442_v43  ;;  %v859_v43 = vadd.f32 %v840_v2, %v745_v44 }
  0xfa   : > { %v1183_v38 = vpop.f32.mrf.mxu3 }
  0xfb   : > { %v2486_v53 = vadd.f32 %v625_v7, %v520_v27  ;;  %v861_v7 = vadd.f32 %v845_v11, %v747_v0 }
 0x100   : > { %v521_v36 = vpop.f32.mrf.mxu1  ;;  %v2488_v37 = vpop.f32.mrf.mxu0 }
 0x101   : > { %v1072_v63 = vpop.f32.mrf.mxu2  ;;  %v522_v30 = vadd.f32 %v521_v36, %v444_v48 }
 0x102   : > { %v1186_v55 = vpop.f32.mrf.mxu3 }
 0x103   : > { %v2490_v26 = vadd.f32 %v627_v16, %v522_v30 }
 0x108   : > { %v952_v39 = vpop.f32.mrf.mxu1  ;;  %v1295_v40 = vpop.f32.mrf.mxu0 }
 0x109   : > { %v972_v41 = vadd.f32 %v952_v39, %v858_v59  ;;  %v1074_v42 = vpop.f32.mrf.mxu2 }
 0x10a   : > { %v1188_v33 = vpop.f32.mrf.mxu3 }
 0x10b   : > { %v1087_v47 = vadd.f32 %v1067_v21, %v972_v41 }
 0x10d   : > { %v1201_v28 = vadd.f32 %v1181_v35, %v1087_v47  ;;  %v749_v35 = vadd.f32 %v2472_v8, %v2480_v25 }
 0x10f   : > { %v1315_v57 = vadd.f32 %v1295_v40, %v1201_v28 }
 0x110   : > { %v954_v49 = vpop.f32.mrf.mxu1  ;;  %v1297_v52 = vpop.f32.mrf.mxu0 }
 0x111   : > { %v973_v13 = vadd.f32 %v954_v49, %v859_v43  ;;  %v1077_v48 = vpop.f32.mrf.mxu2  ;;  %v1353_v61 = vmul.f32 %v1315_v57, %v1315_v57 }
 0x113   : > { %v1088_v56 = vadd.f32 %v1069_v32, %v973_v13 }
 0x115   : > { %v1202_v14 = vadd.f32 %v1183_v38, %v1088_v56  ;;  %v863_v38 = vadd.f32 %v2478_v1, %v749_v35 }
 0x117   : > { %v1316_v60 = vadd.f32 %v1297_v52, %v1202_v14 }
 0x118   : > { %v957_v46 = vpop.f32.mrf.mxu1  ;;  %v1300_v59 = vpop.f32.mrf.mxu0 }
 0x119   : > { %v1982_v2 = vpack.c.bf16 %v1316_v60, %v1315_v57  ;;  %v1339_v45 = vadd.f32 %v1316_v60, %v1315_v57  ;;  %v1354_v51 = vmul.f32 %v1316_v60, %v1316_v60  ;;  %v974_v62 = vadd.f32 %v957_v46, %v860_v6  ;;  %v1079_v5 = vpop.f32.mrf.mxu2  ;;  %v1191_v6 = vpop.f32.mrf.mxu3 }
 0x11a   : > { %v751_v60 = vadd.f32 %v2482_v31, %v2490_v26 }
 0x11b   : > { %1983 = vst [vmem:[%s2498_s17] sm:$0xff] %v1982_v2   ;;  %v1361_v3 = vadd.f32 %v1354_v51, %v1353_v61  ;;  %v1089_v4 = vadd.f32 %v1072_v63, %v974_v62 }
 0x11d   : > { %v1203_v50 = vadd.f32 %v1186_v55, %v1089_v4 }
 0x11f   : > { %v1317_v9 = vadd.f32 %v1300_v59, %v1203_v50  ;;  %v865_v59 = vadd.f32 %v2488_v37, %v751_v60 }
 0x120   : > { %v959_v12 = vpop.f32.mrf.mxu1  ;;  %v1302_v16 = vpop.f32.mrf.mxu0 }
 0x121   : > { %v1340_v17 = vadd.f32 %v1339_v45, %v1317_v9  ;;  %v1355_v18 = vmul.f32 %v1317_v9, %v1317_v9  ;;  %v975_v19 = vadd.f32 %v959_v12, %v861_v7  ;;  %v1082_v58 = vpop.f32.mrf.mxu2  ;;  %v1193_v40 = vpop.f32.mrf.mxu3 }
 0x123   : > { %v1362_v29 = vadd.f32 %v1361_v3, %v1355_v18  ;;  %v1090_v54 = vadd.f32 %v1074_v42, %v975_v19 }
 0x125   : > { %v1204_v21 = vadd.f32 %v1188_v33, %v1090_v54 }
 0x127   : > { %v1318_v22 = vadd.f32 %v1302_v16, %v1204_v21 }
 0x128   : > { %v962_v15 = vpop.f32.mrf.mxu1  ;;  %v1305_v11 = vpop.f32.mrf.mxu0 }
 0x129   : > { %v1987_v23 = vpack.c.bf16 %v1318_v22, %v1317_v9  ;;  %v1341_v32 = vadd.f32 %v1340_v17, %v1318_v22  ;;  %v1356_v24 = vmul.f32 %v1318_v22, %v1318_v22  ;;  %v976_v27 = vadd.f32 %v962_v15, %v2476_v20  ;;  %v1084_v43 = vpop.f32.mrf.mxu2  ;;  %v1196_v14 = vpop.f32.mrf.mxu3 }
 0x12a   : > { %v750_v20 = vadd.f32 %v2474_v10, %v2486_v53 }
 0x12b   : > { %2002 = vst [vmem:[%s2498_s17 + $0x8] sm:$0xff] %v1987_v23   ;;  %v1363_v63 = vadd.f32 %v1362_v29, %v1356_v24  ;;  %v1091_v36 = vadd.f32 %v1077_v48, %v976_v27 }
 0x12c   : > { %v864_v52 = vadd.f32 %v2484_v34, %v750_v20 }
 0x12d   : > { %v1205_v30 = vadd.f32 %v1191_v6, %v1091_v36 }
 0x12f   : > { %v1319_v39 = vadd.f32 %v1305_v11, %v1205_v30 }
 0x130   : > { %v964_v41 = vpop.f32.mrf.mxu1  ;;  %v1307_v8 = vpop.f32.mrf.mxu0 }
 0x131   : > { %v1342_v42 = vadd.f32 %v1341_v32, %v1319_v39  ;;  %v1357_v44 = vmul.f32 %v1319_v39, %v1319_v39  ;;  %v977_v47 = vadd.f32 %v964_v41, %v863_v38  ;;  %v1310_v10 = vpop.f32.mrf.mxu2  ;;  %v1198_v4 = vpop.f32.mrf.mxu3 }
 0x133   : > { %v1364_v28 = vadd.f32 %v1363_v63, %v1357_v44  ;;  %v1092_v49 = vadd.f32 %v1079_v5, %v977_v47 }
 0x135   : > { %v1206_v25 = vadd.f32 %v1193_v40, %v1092_v49 }
 0x137   : > { %v1320_v13 = vadd.f32 %v1307_v8, %v1206_v25 }
 0x138   : > { %v967_v55 = vpop.f32.mrf.mxu1 }
 0x139   : > { %v1992_v1 = vpack.c.bf16 %v1320_v13, %v1319_v39  ;;  %v1343_v56 = vadd.f32 %v1342_v42, %v1320_v13  ;;  %v1358_v57 = vmul.f32 %v1320_v13, %v1320_v13  ;;  %v978_v48 = vadd.f32 %v967_v55, %v864_v52  ;;  %v1312_v50 = vpop.f32.mrf.mxu2 }
 0x13b   : > { %2003 = vst [vmem:[%s2498_s17 + $0x10] sm:$0xff] %v1992_v1   ;;  %v1365_v61 = vadd.f32 %v1364_v28, %v1358_v57  ;;  %v1093_v46 = vadd.f32 %v1082_v58, %v978_v48 }
 0x13d   : > { %v1207_v53 = vadd.f32 %v1196_v14, %v1093_v46 }
 0x13f   : > { %v1321_v2 = vadd.f32 %v1310_v10, %v1207_v53 }
 0x140   : > { %v969_v34 = vpop.f32.mrf.mxu1 }
 0x141   : > { %v1344_v45 = vadd.f32 %v1343_v56, %v1321_v2  ;;  %v1359_v51 = vmul.f32 %v1321_v2, %v1321_v2  ;;  %v979_v62 = vadd.f32 %v969_v34, %v865_v59 }
 0x143   : > { %v1366_v0 = vadd.f32 %v1365_v61, %v1359_v51  ;;  %v1094_v3 = vadd.f32 %v1084_v43, %v979_v62 }
 0x145   : > { %v1208_v33 = vadd.f32 %v1198_v4, %v1094_v3 }
 0x147   : > { %v1322_v31 = vadd.f32 %v1312_v50, %v1208_v33 }
 0x149   : > { %v1997_v26 = vpack.c.bf16 %v1322_v31, %v1321_v2  ;;  %v1345_v5 = vadd.f32 %v1344_v45, %v1322_v31  ;;  %v1360_v7 = vmul.f32 %v1322_v31, %v1322_v31 }
 0x14b   : > { %2004 = vst [vmem:[%s2498_s17 + $0x18] sm:$0xff] %v1997_v26   ;;  %v1346_v9 = vrot.slane %v1345_v5, 4  ;;  %v1367_v12 = vadd.f32 %v1366_v0, %v1360_v7 }
 0x14d   : > { %v1347_v16 = vadd.f32 %v1346_v9, %v1345_v5  ;;  %v1368_v37 = vrot.slane %v1367_v12, 4 }
 0x14f   : > { %v1348_v17 = vrot.slane %v1347_v16, 2  ;;  %v1369_v18 = vadd.f32 %v1368_v37, %v1367_v12 }
 0x151   : > { %v1349_v19 = vadd.f32 %v1348_v17, %v1347_v16  ;;  %v1370_v29 = vrot.slane %v1369_v18, 2 }
 0x153   : > { %v1350_v54 = vrot.slane %v1349_v19, 1  ;;  %v1371_v21 = vadd.f32 %v1370_v29, %v1369_v18 }
 0x155   : > { %v1351_v6 = vadd.f32 %v1350_v54, %v1349_v19  ;;  %v1372_v22 = vrot.slane %v1371_v21, 1 }
 0x157   : > { %1352 = vst [vmem:[%s235_s22] sm:$0x1] %v1351_v6  ;;  %v1373_v58 = vadd.f32 %v1372_v22, %v1371_v21 }
 0x159   : > { %1374 = vst [vmem:[%s235_s22 + $0x1] sm:$0x1] %v1373_v58 }
 0x15a PF: > { %s16_s18 = sadd.s32 1, %s2038_s18  }
 0x15b   : > { %p13_p4 = scmp.ge.s32.totalorder %s16_s18, 4  }
 0x15d   :  { %15 = sbr.rel (!%p13_p4) target bundleno = 1 (0x1), region = 88 }

</bundles_post_ra>
